<compile_context>
chip_gen: v7x
topology: tpu7x:2x2x1
jax: 0.10.0
libtpu: 0.0.40
codegen_flags: <defaults>
</compile_context>

<pallas_src>
import functools
import math

import numpy as np
import jax
import jax.numpy as jnp
from jax.experimental import pallas as pl
from jax.experimental.pallas import tpu as pltpu


def _plan_tiles(n, dx, de, main_param_bytes, vmem_budget, tq=None):
  """Pick the largest query tile (multiple of 8, <=128, dividing n) whose per-step
  VMEM footprint fits the device budget; also return the footprint estimate."""
  fixed = (2 * n * dx * 4            # X (full) block, double-buffered
           + 3 * n * dx * 4          # Q/K/V projection temporaries
           + 2 * main_param_bytes    # weights, double-buffered
           + 8 * n * 4               # masks (col/row), double-buffered
           + (2 << 20))              # misc small temps / semaphores slack

  def step_bytes(t):
    return (5 * t * n * de * 4       # E in (x2) + newE out (x2) + newE temp
            + 4 * t * n * dx * 4)    # Y / E1p1 / Yexp / one extra live slab

  if tq is None:
    cands = [c for c in (128, 64, 32, 16, 8) if n % c == 0]
    if not cands:
      # TODO(synk): pad n to a multiple of 8 instead of a single full-row block.
      cands = [n]
    tq = cands[-1]
    for c in cands:
      if fixed + step_bytes(c) <= vmem_budget:
        tq = c
        break
  return tq, fixed + step_bytes(tq)


# --------------------------- main kernel: newX / newE / edge stats -------------------
def fuser_block_kernel(
    flag_ref,                                    # scalar prefetch (SMEM): (1,) int32
    X_ref, E_ref, y_ref, yc_ref, mf_ref, mr_ref,
    Wq_ref, bq_ref, Wkv_ref, bkv_ref, We_ref, be1_ref,
    Wyx_ref, byx_ref, WyeT_ref, byeT_ref,
    Weo_ref, beo_ref, Wxo_ref, bxo_ref,
    newX_ref, newE_ref, estats_ref,
    *, n, tq, dx, de, n_head):
  df = dx // n_head
  inv_sqrt_df = 1.0 / math.sqrt(df)
  q_idx = pl.program_id(1)
  q0 = pl.multiple_of(q_idx * tq, tq)

  Xf = X_ref[0]                           # (n, dx)   full node features
  E = E_ref[0]                            # (tq, n, de)
  yv = y_ref[0]                           # (1, dy)   global features (row)
  yc = yc_ref[0]                          # (dy, 1)   global features (column)
  mf = mf_ref[0]                          # (n, 1)    node mask (column)
  mr = mr_ref[0]                          # (1, n)    node mask (row)
  Xq = X_ref[0, pl.ds(q0, tq), :]         # (tq, dx)  query rows (sliced, no 2nd stream)
  mq = mf_ref[0, pl.ds(q0, tq), :]        # (tq, 1)

  def lin(x, w_ref, b_ref):
    return jnp.dot(x, w_ref[...], preferred_element_type=jnp.float32) + b_ref[...]

  # Projections.  1/sqrt(df) rides the Q mask multiply; K/V share one fused matmul.
  Q = lin(Xq, Wq_ref, bq_ref) * (mq * inv_sqrt_df)        # (tq, dx)
  KV = lin(Xf, Wkv_ref, bkv_ref) * mf                     # (n, 2*dx)
  K = KV[:, :dx]
  V = KV[:, dx:]

  # Per-pair scores, heads flattened in the feature dim.  be1 = e_mul bias + 1, so
  # E1p1 already carries the "+1".  The E1 pair mask is dropped because Q and K are
  # masked, hence Y == 0 at every masked pair (restore it if Q/K masking ever moves).
  E1p1 = lin(E.reshape(tq * n, de), We_ref, be1_ref).reshape(tq, n, dx)
  Y = (Q[:, None, :] * K[None, :, :]) * E1p1              # (tq, n, dx)

  # y -> modulations.  yx2 stays a row (for newX); ye2 is produced directly as a
  # column so (ye2 + 1) folds into the e_out weight instead of a slab multiply.
  yx2 = lin(yv, Wyx_ref, byx_ref)                         # (1, dx)
  ye2_col = (jnp.dot(WyeT_ref[...], yc, preferred_element_type=jnp.float32)
             + byeT_ref[...])                             # (dx, 1)
  Weo_mod = (ye2_col + 1.0) * Weo_ref[...]                # (dx, de)

  # New edge features:  ((ye2+1) * Y) @ Weo == Y @ (diag(ye2+1) Weo) == Y @ Weo_mod.
  pair_mask = (mq * mr)[:, :, None]                       # (tq, n, 1)
  newE = (jnp.dot(Y.reshape(tq * n, dx), Weo_mod,
                  preferred_element_type=jnp.float32)
          + beo_ref[...]).reshape(tq, n, de)
  newE_ref[0] = newE * pair_mask

  # Masked softmax over the key axis.  Masked keys have Y == 0 exactly, so shifting
  # by the unmasked row max is valid; zeroing after exp restores the mask.
  Ymax = jnp.max(Y, axis=1, keepdims=True)                # (tq, 1, dx)
  Yexp = jnp.exp(Y - Ymax) * mr[:, :, None]               # (tq, n, dx)
  denom = jnp.sum(Yexp, axis=1)                           # (tq, dx)
  wV = jnp.sum(Yexp * V[None, :, :], axis=1)              # (tq, dx)
  # torch masked_softmax returns the raw scores when the WHOLE mask is zero; in that
  # case V == 0, so sum(Y * V) == 0.  Normalization is exact (off the big slab now).
  weighted_V = jnp.where(flag_ref[0] > 0, wV / denom, jnp.zeros_like(wV))

  # New node features.
  newX = (yx2 + 1.0) * weighted_V                         # (tq, dx)
  newX_ref[0] = lin(newX, Wxo_ref, bxo_ref) * mq

  # Per-block edge statistics for the y path: [sum | M2(centered) | min | max],
  # lane-packed into (1, 4*de).  Exact merge happens in the small second kernel.
  Ef = E.reshape(tq * n, de)
  s = jnp.sum(Ef, axis=0, keepdims=True)                  # (1, de)
  mb = s * (1.0 / (tq * n))
  Ec = Ef - mb
  m2 = jnp.sum(Ec * Ec, axis=0, keepdims=True)
  mn = jnp.min(Ef, axis=0, keepdims=True)
  mx = jnp.max(Ef, axis=0, keepdims=True)
  estats_ref[0, 0, :, 0 * de:1 * de] = s
  estats_ref[0, 0, :, 1 * de:2 * de] = m2
  estats_ref[0, 0, :, 2 * de:3 * de] = mn
  estats_ref[0, 0, :, 3 * de:4 * de] = mx


# --------------------------- second kernel: global-feature (y) path ------------------
def y_path_kernel(
    X_ref, y_ref, es_ref,
    Wyy_ref, byy_ref, Wxy_ref, bxy_ref, Wey_ref, bey_ref,
    Wy1_ref, by1_ref, Wy2_ref, by2_ref,
    newy_ref, *, n, tq, dx, de):
  Xf = X_ref[0]                                           # (n, dx)
  yv = y_ref[0]                                           # (1, dy)
  st = es_ref[0]                                          # (nq, 1, 4*de)

  def lin(x, w_ref, b_ref):
    return jnp.dot(x, w_ref[...], preferred_element_type=jnp.float32) + b_ref[...]

  # Xtoy: mean / min / max / std (ddof=1) over nodes.
  xm = jnp.mean(Xf, axis=0, keepdims=True)
  xmi = jnp.min(Xf, axis=0, keepdims=True)
  xma = jnp.max(Xf, axis=0, keepdims=True)
  xstd = jnp.sqrt(jnp.sum((Xf - xm) ** 2, axis=0, keepdims=True) / (n - 1))
  Wxy = Wxy_ref[...]                                      # (4*dx, dy)
  x_y = (jnp.dot(xm, Wxy[0:dx], preferred_element_type=jnp.float32)
         + jnp.dot(xmi, Wxy[dx:2 * dx], preferred_element_type=jnp.float32)
         + jnp.dot(xma, Wxy[2 * dx:3 * dx], preferred_element_type=jnp.float32)
         + jnp.dot(xstd, Wxy[3 * dx:4 * dx], preferred_element_type=jnp.float32)
         + bxy_ref[...])

  # Etoy: exact merge of the per-block statistics emitted by the main kernel.
  c = float(tq * n)
  npairs = float(n * n)
  sums = st[:, :, 0 * de:1 * de]                          # (nq, 1, de)
  m2s = st[:, :, 1 * de:2 * de]
  mins = st[:, :, 2 * de:3 * de]
  maxs = st[:, :, 3 * de:4 * de]
  tot = jnp.sum(sums, axis=0)                             # (1, de)
  e_mean = tot * (1.0 / npairs)
  bmeans = sums * (1.0 / c)                               # (nq, 1, de)
  m2_tot = (jnp.sum(m2s, axis=0)
            + c * jnp.sum((bmeans - e_mean) ** 2, axis=0))
  e_std = jnp.sqrt(m2_tot / (npairs - 1.0))
  e_min = jnp.min(mins, axis=0)
  e_max = jnp.max(maxs, axis=0)
  Wey = Wey_ref[...]                                      # (4*de, dy)
  e_y = (jnp.dot(e_mean, Wey[0:de], preferred_element_type=jnp.float32)
         + jnp.dot(e_min, Wey[de:2 * de], preferred_element_type=jnp.float32)
         + jnp.dot(e_max, Wey[2 * de:3 * de], preferred_element_type=jnp.float32)
         + jnp.dot(e_std, Wey[3 * de:4 * de], preferred_element_type=jnp.float32)
         + bey_ref[...])

  y_y = lin(yv, Wyy_ref, byy_ref)                         # (1, dy)
  new_y = y_y + x_y + e_y
  h = jnp.maximum(lin(new_y, Wy1_ref, by1_ref), 0.0)
  newy_ref[0] = lin(h, Wy2_ref, by2_ref)


# ----------------------------------- wrapper -----------------------------------------
def fuser_block_pallas(params, X, E, y, node_mask, n_head, tq=None):
  bs, n, dx = X.shape
  de = E.shape[-1]
  dy = y.shape[-1]

  nm = node_mask.astype(jnp.float32)
  mcol = nm[:, :, None]                  # (bs, n, 1)
  mrow = nm[:, None, :]                  # (bs, 1, n)
  y3 = y[:, None, :]                     # (bs, 1, dy)
  ycol = y[:, :, None]                   # (bs, dy, 1)
  flag = (jnp.sum(nm) > 0).astype(jnp.int32).reshape(1)

  # Wrapper-side parameter fusion / folds (numerics identical to separate ops).
  Wkv = jnp.concatenate([params["k_w"], params["v_w"]], axis=1)
  bkv = jnp.concatenate([params["k_b"], params["v_b"]], axis=1)
  be1 = params["e_mul_b"] + 1.0                  # e_mul bias with the "+1" folded in
  WyeT = params["y_e_mul_w"].T                   # (dx, dy): column-form y_e_mul
  byeT = params["y_e_mul_b"].T                   # (dx, 1)

  main_params = [
      params["q_w"], params["q_b"], Wkv, bkv,
      params["e_mul_w"], be1,
      params["y_x_mul_w"], params["y_x_mul_b"], WyeT, byeT,
      params["e_out_w"], params["e_out_b"],
      params["x_out_w"], params["x_out_b"],
  ]
  y_params = [
      params["y_y_w"], params["y_y_b"], params["x_y_w"], params["x_y_b"],
      params["e_y_w"], params["e_y_b"],
      params["y_out1_w"], params["y_out1_b"], params["y_out2_w"], params["y_out2_b"],
  ]

  # Device-aware VMEM budget and query-tile selection (v7x: 64 MiB, v5e/v6e: 128 MiB).
  try:
    vmem_cap = int(pltpu.get_tpu_info().vmem_capacity_bytes)
  except Exception:
    vmem_cap = 128 * 1024 * 1024
  vmem_budget = int(0.75 * vmem_cap)
  main_param_bytes = sum(int(np.prod(p.shape)) * 4 for p in main_params)
  tq, est_bytes = _plan_tiles(n, dx, de, main_param_bytes, vmem_budget, tq)
  assert n % tq == 0, (n, tq)
  nq = n // tq
  vmem_limit = int(min(vmem_budget, max(est_bytes, 16 * 1024 * 1024)))

  # ------------------------------ main pallas_call ------------------------------
  kernel1 = functools.partial(fuser_block_kernel, n=n, tq=tq, dx=dx, de=de,
                              n_head=n_head)
  wspecs1 = [pl.BlockSpec(p.shape, lambda b, q, f, nd=p.ndim: (0,) * nd)
             for p in main_params]
  gs1 = pltpu.PrefetchScalarGridSpec(
      num_scalar_prefetch=1,
      grid=(bs, nq),
      in_specs=[
          pl.BlockSpec((1, n, dx), lambda b, q, f: (b, 0, 0)),         # X (full)
          pl.BlockSpec((1, tq, n, de), lambda b, q, f: (b, q, 0, 0)),  # E (query block)
          pl.BlockSpec((1, 1, dy), lambda b, q, f: (b, 0, 0)),         # y (row)
          pl.BlockSpec((1, dy, 1), lambda b, q, f: (b, 0, 0)),         # y (column)
          pl.BlockSpec((1, n, 1), lambda b, q, f: (b, 0, 0)),          # mask (column)
          pl.BlockSpec((1, 1, n), lambda b, q, f: (b, 0, 0)),          # mask (row)
      ] + wspecs1,
      out_specs=[
          pl.BlockSpec((1, tq, dx), lambda b, q, f: (b, q, 0)),
          pl.BlockSpec((1, tq, n, de), lambda b, q, f: (b, q, 0, 0)),
          pl.BlockSpec((1, 1, 1, 4 * de), lambda b, q, f: (b, q, 0, 0)),
      ],
  )
  newX, newE, estats = pl.pallas_call(
      kernel1,
      grid_spec=gs1,
      out_shape=(
          jax.ShapeDtypeStruct((bs, n, dx), jnp.float32),
          jax.ShapeDtypeStruct((bs, n, n, de), jnp.float32),
          jax.ShapeDtypeStruct((bs, nq, 1, 4 * de), jnp.float32),
      ),
      compiler_params=pltpu.CompilerParams(
          dimension_semantics=("parallel", "parallel"),
          vmem_limit_bytes=vmem_limit),
  )(flag, X, E, y3, ycol, mcol, mrow, *main_params)

  # ------------------------------ y-path pallas_call ----------------------------
  kernel2 = functools.partial(y_path_kernel, n=n, tq=tq, dx=dx, de=de)
  wspecs2 = [pl.BlockSpec(p.shape, lambda b, nd=p.ndim: (0,) * nd) for p in y_params]
  gs2 = pltpu.PrefetchScalarGridSpec(
      num_scalar_prefetch=0,
      grid=(bs,),
      in_specs=[
          pl.BlockSpec((1, n, dx), lambda b: (b, 0, 0)),
          pl.BlockSpec((1, 1, dy), lambda b: (b, 0, 0)),
          pl.BlockSpec((1, nq, 1, 4 * de), lambda b: (b, 0, 0, 0)),
      ] + wspecs2,
      out_specs=pl.BlockSpec((1, 1, dy), lambda b: (b, 0, 0)),
  )
  newy = pl.pallas_call(
      kernel2,
      grid_spec=gs2,
      out_shape=jax.ShapeDtypeStruct((bs, 1, dy), jnp.float32),
      compiler_params=pltpu.CompilerParams(dimension_semantics=("parallel",)),
  )(X, y3, estats, *y_params)

  return newX, newE, newy[:, 0, :]


# ---------------------------- pure-JAX reference (torch port) ------------------------
def fuser_block_ref(params, X, E, y, node_mask, n_head):
  bs, n, dx = X.shape
  de = E.shape[-1]
  df = dx // n_head
  nm = node_mask.astype(jnp.float32)
  x_mask = nm[:, :, None]                 # (bs, n, 1)
  e_mask1 = x_mask[:, :, None, :]         # (bs, n, 1, 1)
  e_mask2 = x_mask[:, None, :, :]         # (bs, 1, n, 1)

  def lin(x, name):
    return x @ params[name + "_w"] + params[name + "_b"]

  Q = lin(X, "q") * x_mask
  K = lin(X, "k") * x_mask
  Q5 = Q.reshape(bs, n, n_head, df)[:, :, None]        # (bs,n,1,h,df)
  K5 = K.reshape(bs, n, n_head, df)[:, None]           # (bs,1,n,h,df)
  Y = Q5 * K5 / math.sqrt(df)
  E1 = lin(E, "e_mul") * e_mask1 * e_mask2
  Y = Y * (E1.reshape(bs, n, n, n_head, df) + 1.0)
  newE = Y.reshape(bs, n, n, dx)
  ye2 = lin(y, "y_e_mul")[:, None, None, :]
  newE = (ye2 + 1.0) * newE
  newE = lin(newE, "e_out") * e_mask1 * e_mask2

  softmax_mask = jnp.broadcast_to(e_mask2, (bs, n, n, n_head))
  Ym = jnp.where(softmax_mask[..., None] > 0, Y, -jnp.inf)
  Ymax = jnp.max(Ym, axis=2, keepdims=True)
  Yexp = jnp.exp(Ym - Ymax)
  attn_sm = Yexp / jnp.sum(Yexp, axis=2, keepdims=True)
  attn = jnp.where(jnp.sum(softmax_mask) > 0, attn_sm, Y)

  V = (lin(X, "v") * x_mask).reshape(bs, n, n_head, df)[:, None]
  weighted_V = (attn * V).sum(axis=2).reshape(bs, n, dx)
  yx2 = lin(y, "y_x_mul")[:, None, :]
  newX = (yx2 + 1.0) * weighted_V
  newX = lin(newX, "x_out") * x_mask

  yy = lin(y, "y_y")
  zx = jnp.concatenate([X.mean(axis=1), X.min(axis=1), X.max(axis=1),
                        jnp.std(X, axis=1, ddof=1)], axis=-1)
  x_y = zx @ params["x_y_w"] + params["x_y_b"]
  Ef = E.reshape(bs, n * n, de)
  ze = jnp.concatenate([Ef.mean(axis=1), Ef.min(axis=1), Ef.max(axis=1),
                        jnp.std(Ef, axis=1, ddof=1)], axis=-1)
  e_y = ze @ params["e_y_w"] + params["e_y_b"]
  new_y = yy + x_y + e_y
  h = jnp.maximum(new_y @ params["y_out1_w"] + params["y_out1_b"], 0.0)
  new_y = h @ params["y_out2_w"] + params["y_out2_b"]
  return newX, newE, new_y


def init_params(key, dx, de, dy):
  shapes = [
      ("q", dx, dx), ("k", dx, dx), ("v", dx, dx),
      ("e_mul", de, dx), ("y_e_mul", dy, dx), ("y_x_mul", dy, dx),
      ("y_y", dy, dy), ("x_y", 4 * dx, dy), ("e_y", 4 * de, dy),
      ("x_out", dx, dx), ("e_out", dx, de),
      ("y_out1", dy, dy), ("y_out2", dy, dy),
  ]
  params = {}
  for i, (name, fin, fout) in enumerate(shapes):
    kw, kb = jax.random.split(jax.random.fold_in(key, i))
    params[name + "_w"] = (jax.random.normal(kw, (fin, fout), jnp.float32)
                           * (1.0 / math.sqrt(fin)))
    params[name + "_b"] = jax.random.normal(kb, (1, fout), jnp.float32) * 0.02
  return params


if __name__ == "__main__":
  bs, n, dx, de, dy, n_head = 2, 8, 32, 16, 8, 4
  key = jax.random.PRNGKey(0)
  kx, ke, ky, kp = jax.random.split(key, 4)
  X = jax.random.normal(kx, (bs, n, dx), jnp.float32)
  E = jax.random.normal(ke, (bs, n, n, de), jnp.float32)
  y = jax.random.normal(ky, (bs, dy), jnp.float32)
  node_mask = jnp.array([[1, 1, 1, 1, 1, 1, 0, 0],
                         [1, 1, 1, 1, 1, 0, 0, 0]], dtype=jnp.float32)
  params = init_params(kp, dx, de, dy)

  outs = fuser_block_pallas(params, X, E, y, node_mask, n_head)
  outs = jax.block_until_ready(outs)

  newX, newE, newy = outs
  rX, rE, ry = fuser_block_ref(params, X, E, y, node_mask, n_head)
  np.testing.assert_allclose(np.asarray(newX), np.asarray(rX), rtol=1e-3, atol=1e-3)
  np.testing.assert_allclose(np.asarray(newE), np.asarray(rE), rtol=1e-3, atol=1e-3)
  np.testing.assert_allclose(np.asarray(newy), np.asarray(ry), rtol=1e-3, atol=1e-3)

  print("KERNEL_OK")
</pallas_src>

<mosaic_0001>
module attributes {stable_mosaic.version = 11 : i64} {
  func.func @fuser_block_kernel(%arg0: i32, %arg1: i32, %arg2: memref<1xi32, #tpu.memory_space<smem>>, %arg3: memref<1x8x32xf32, #tpu.memory_space<vmem>>, %arg4: memref<1x8x8x16xf32, #tpu.memory_space<vmem>>, %arg5: memref<1x1x8xf32, #tpu.memory_space<vmem>>, %arg6: memref<1x8x1xf32, #tpu.memory_space<vmem>>, %arg7: memref<1x8x1xf32, #tpu.memory_space<vmem>>, %arg8: memref<1x1x8xf32, #tpu.memory_space<vmem>>, %arg9: memref<32x32xf32, #tpu.memory_space<vmem>>, %arg10: memref<1x32xf32, #tpu.memory_space<vmem>>, %arg11: memref<32x64xf32, #tpu.memory_space<vmem>>, %arg12: memref<1x64xf32, #tpu.memory_space<vmem>>, %arg13: memref<16x32xf32, #tpu.memory_space<vmem>>, %arg14: memref<1x32xf32, #tpu.memory_space<vmem>>, %arg15: memref<8x32xf32, #tpu.memory_space<vmem>>, %arg16: memref<1x32xf32, #tpu.memory_space<vmem>>, %arg17: memref<32x8xf32, #tpu.memory_space<vmem>>, %arg18: memref<32x1xf32, #tpu.memory_space<vmem>>, %arg19: memref<32x16xf32, #tpu.memory_space<vmem>>, %arg20: memref<1x16xf32, #tpu.memory_space<vmem>>, %arg21: memref<32x32xf32, #tpu.memory_space<vmem>>, %arg22: memref<1x32xf32, #tpu.memory_space<vmem>>, %arg23: memref<1x8x32xf32, #tpu.memory_space<vmem>>, %arg24: memref<1x8x8x16xf32, #tpu.memory_space<vmem>>, %arg25: memref<1x1x1x64xf32, #tpu.memory_space<vmem>>) attributes {dimension_semantics = [#tpu.dimension_semantics<parallel>, #tpu.dimension_semantics<parallel>], iteration_bounds = array<i64: 2, 1>, scalar_prefetch = 1 : i64, scratch_operands = 0 : i64, tpu.core_type = #tpu.core_type<tc>, window_params = [{transform_indices = @transform_0, window_bounds = array<i64: 1, 8, 32>}, {transform_indices = @transform_1, window_bounds = array<i64: 1, 8, 8, 16>}, {transform_indices = @transform_2, window_bounds = array<i64: 1, 1, 8>}, {transform_indices = @transform_3, window_bounds = array<i64: 1, 8, 1>}, {transform_indices = @transform_4, window_bounds = array<i64: 1, 8, 1>}, {transform_indices = @transform_5, window_bounds = array<i64: 1, 1, 8>}, {pipeline_mode = #tpu.pipeline_mode<synchronous>, transform_indices = @transform_6, window_bounds = array<i64: 32, 32>}, {pipeline_mode = #tpu.pipeline_mode<synchronous>, transform_indices = @transform_7, window_bounds = array<i64: 1, 32>}, {pipeline_mode = #tpu.pipeline_mode<synchronous>, transform_indices = @transform_8, window_bounds = array<i64: 32, 64>}, {pipeline_mode = #tpu.pipeline_mode<synchronous>, transform_indices = @transform_9, window_bounds = array<i64: 1, 64>}, {pipeline_mode = #tpu.pipeline_mode<synchronous>, transform_indices = @transform_10, window_bounds = array<i64: 16, 32>}, {pipeline_mode = #tpu.pipeline_mode<synchronous>, transform_indices = @transform_11, window_bounds = array<i64: 1, 32>}, {pipeline_mode = #tpu.pipeline_mode<synchronous>, transform_indices = @transform_12, window_bounds = array<i64: 8, 32>}, {pipeline_mode = #tpu.pipeline_mode<synchronous>, transform_indices = @transform_13, window_bounds = array<i64: 1, 32>}, {pipeline_mode = #tpu.pipeline_mode<synchronous>, transform_indices = @transform_14, window_bounds = array<i64: 32, 8>}, {pipeline_mode = #tpu.pipeline_mode<synchronous>, transform_indices = @transform_15, window_bounds = array<i64: 32, 1>}, {pipeline_mode = #tpu.pipeline_mode<synchronous>, transform_indices = @transform_16, window_bounds = array<i64: 32, 16>}, {pipeline_mode = #tpu.pipeline_mode<synchronous>, transform_indices = @transform_17, window_bounds = array<i64: 1, 16>}, {pipeline_mode = #tpu.pipeline_mode<synchronous>, transform_indices = @transform_18, window_bounds = array<i64: 32, 32>}, {pipeline_mode = #tpu.pipeline_mode<synchronous>, transform_indices = @transform_19, window_bounds = array<i64: 1, 32>}, {transform_indices = @transform_20, window_bounds = array<i64: 1, 8, 32>}, {transform_indices = @transform_21, window_bounds = array<i64: 1, 8, 8, 16>}, {transform_indices = @transform_22, window_bounds = array<i64: 1, 1, 1, 64>}]} {
    %c8_i32 = arith.constant 8 : i32
    %0 = arith.muli %arg1, %c8_i32 : i32
    %1 = tpu.assume_multiple %0, 8 : i32
    %c0 = arith.constant 0 : index
    %c0_0 = arith.constant 0 : index
    %c0_1 = arith.constant 0 : index
    %2 = vector.load %arg3[%c0, %c0_0, %c0_1] : memref<1x8x32xf32, #tpu.memory_space<vmem>>, vector<1x8x32xf32>
    %3 = vector.shape_cast %2 : vector<1x8x32xf32> to vector<8x32xf32>
    %c0_2 = arith.constant 0 : index
    %c0_3 = arith.constant 0 : index
    %c0_4 = arith.constant 0 : index
    %c0_5 = arith.constant 0 : index
    %4 = vector.load %arg4[%c0_2, %c0_3, %c0_4, %c0_5] : memref<1x8x8x16xf32, #tpu.memory_space<vmem>>, vector<1x8x8x16xf32>
    %5 = vector.shape_cast %4 : vector<1x8x8x16xf32> to vector<8x8x16xf32>
    %c0_6 = arith.constant 0 : index
    %c0_7 = arith.constant 0 : index
    %c0_8 = arith.constant 0 : index
    %6 = vector.load %arg5[%c0_6, %c0_7, %c0_8] : memref<1x1x8xf32, #tpu.memory_space<vmem>>, vector<1x1x8xf32>
    %7 = vector.shape_cast %6 : vector<1x1x8xf32> to vector<1x8xf32>
    %c0_9 = arith.constant 0 : index
    %c0_10 = arith.constant 0 : index
    %c0_11 = arith.constant 0 : index
    %8 = vector.load %arg6[%c0_9, %c0_10, %c0_11] : memref<1x8x1xf32, #tpu.memory_space<vmem>>, vector<1x8x1xf32>
    %9 = vector.shape_cast %8 : vector<1x8x1xf32> to vector<8x1xf32>
    %c0_12 = arith.constant 0 : index
    %c0_13 = arith.constant 0 : index
    %c0_14 = arith.constant 0 : index
    %10 = vector.load %arg7[%c0_12, %c0_13, %c0_14] : memref<1x8x1xf32, #tpu.memory_space<vmem>>, vector<1x8x1xf32>
    %11 = vector.shape_cast %10 : vector<1x8x1xf32> to vector<8x1xf32>
    %c0_15 = arith.constant 0 : index
    %c0_16 = arith.constant 0 : index
    %c0_17 = arith.constant 0 : index
    %12 = vector.load %arg8[%c0_15, %c0_16, %c0_17] : memref<1x1x8xf32, #tpu.memory_space<vmem>>, vector<1x1x8xf32>
    %13 = vector.shape_cast %12 : vector<1x1x8xf32> to vector<1x8xf32>
    %c0_18 = arith.constant 0 : index
    %14 = arith.index_cast %1 : i32 to index
    %c0_19 = arith.constant 0 : index
    %15 = vector.load %arg3[%c0_18, %14, %c0_19] : memref<1x8x32xf32, #tpu.memory_space<vmem>>, vector<1x8x32xf32>
    %16 = vector.shape_cast %15 : vector<1x8x32xf32> to vector<8x32xf32>
    %c0_20 = arith.constant 0 : index
    %17 = arith.index_cast %1 : i32 to index
    %c0_21 = arith.constant 0 : index
    %18 = vector.load %arg7[%c0_20, %17, %c0_21] : memref<1x8x1xf32, #tpu.memory_space<vmem>>, vector<1x8x1xf32>
    %19 = vector.shape_cast %18 : vector<1x8x1xf32> to vector<8x1xf32>
    %c0_22 = arith.constant 0 : index
    %c0_23 = arith.constant 0 : index
    %20 = vector.load %arg9[%c0_22, %c0_23] : memref<32x32xf32, #tpu.memory_space<vmem>>, vector<32x32xf32>
    %cst = arith.constant dense<0.000000e+00> : vector<8x32xf32>
    %21 = tpu.matmul %16, %20, %cst {dimension_numbers = #tpu.dot_dimension_numbers<[1], [0], [0], [1], [0, 0, 1, 1], [], []>} : vector<8x32xf32>, vector<32x32xf32>, vector<8x32xf32> -> vector<8x32xf32>
    %c0_24 = arith.constant 0 : index
    %c0_25 = arith.constant 0 : index
    %22 = vector.load %arg10[%c0_24, %c0_25] : memref<1x32xf32, #tpu.memory_space<vmem>>, vector<1x32xf32>
    %23 = vector.broadcast %22 : vector<1x32xf32> to vector<8x32xf32>
    %24 = arith.addf %21, %23 : vector<8x32xf32>
    %cst_26 = arith.constant 0.353553385 : f32
    %25 = vector.broadcast %cst_26 : f32 to vector<8x1xf32>
    %26 = arith.mulf %19, %25 : vector<8x1xf32>
    %27 = vector.broadcast %26 : vector<8x1xf32> to vector<8x32xf32>
    %28 = arith.mulf %24, %27 : vector<8x32xf32>
    %c0_27 = arith.constant 0 : index
    %c0_28 = arith.constant 0 : index
    %29 = vector.load %arg11[%c0_27, %c0_28] : memref<32x64xf32, #tpu.memory_space<vmem>>, vector<32x64xf32>
    %cst_29 = arith.constant dense<0.000000e+00> : vector<8x64xf32>
    %30 = tpu.matmul %3, %29, %cst_29 {dimension_numbers = #tpu.dot_dimension_numbers<[1], [0], [0], [1], [0, 0, 1, 1], [], []>} : vector<8x32xf32>, vector<32x64xf32>, vector<8x64xf32> -> vector<8x64xf32>
    %c0_30 = arith.constant 0 : index
    %c0_31 = arith.constant 0 : index
    %31 = vector.load %arg12[%c0_30, %c0_31] : memref<1x64xf32, #tpu.memory_space<vmem>>, vector<1x64xf32>
    %32 = vector.broadcast %31 : vector<1x64xf32> to vector<8x64xf32>
    %33 = arith.addf %30, %32 : vector<8x64xf32>
    %34 = vector.broadcast %11 : vector<8x1xf32> to vector<8x64xf32>
    %35 = arith.mulf %33, %34 : vector<8x64xf32>
    %36 = vector.extract_strided_slice %35 {offsets = [0, 0], sizes = [8, 32], strides = [1, 1]} : vector<8x64xf32> to vector<8x32xf32>
    %37 = vector.extract_strided_slice %35 {offsets = [0, 32], sizes = [8, 32], strides = [1, 1]} : vector<8x64xf32> to vector<8x32xf32>
    %38 = vector.shape_cast %5 : vector<8x8x16xf32> to vector<64x16xf32>
    %c0_32 = arith.constant 0 : index
    %c0_33 = arith.constant 0 : index
    %39 = vector.load %arg13[%c0_32, %c0_33] : memref<16x32xf32, #tpu.memory_space<vmem>>, vector<16x32xf32>
    %cst_34 = arith.constant dense<0.000000e+00> : vector<64x32xf32>
    %40 = tpu.matmul %38, %39, %cst_34 {dimension_numbers = #tpu.dot_dimension_numbers<[1], [0], [0], [1], [0, 0, 1, 1], [], []>} : vector<64x16xf32>, vector<16x32xf32>, vector<64x32xf32> -> vector<64x32xf32>
    %c0_35 = arith.constant 0 : index
    %c0_36 = arith.constant 0 : index
    %41 = vector.load %arg14[%c0_35, %c0_36] : memref<1x32xf32, #tpu.memory_space<vmem>>, vector<1x32xf32>
    %42 = vector.broadcast %41 : vector<1x32xf32> to vector<64x32xf32>
    %43 = arith.addf %40, %42 : vector<64x32xf32>
    %44 = vector.shape_cast %43 : vector<64x32xf32> to vector<8x8x32xf32>
    %45 = vector.shape_cast %28 : vector<8x32xf32> to vector<8x1x32xf32>
    %46 = vector.shape_cast %36 : vector<8x32xf32> to vector<1x8x32xf32>
    %47 = vector.broadcast %45 : vector<8x1x32xf32> to vector<8x8x32xf32>
    %48 = vector.broadcast %46 : vector<1x8x32xf32> to vector<8x8x32xf32>
    %49 = arith.mulf %47, %48 : vector<8x8x32xf32>
    %50 = arith.mulf %49, %44 : vector<8x8x32xf32>
    %c0_37 = arith.constant 0 : index
    %c0_38 = arith.constant 0 : index
    %51 = vector.load %arg15[%c0_37, %c0_38] : memref<8x32xf32, #tpu.memory_space<vmem>>, vector<8x32xf32>
    %cst_39 = arith.constant dense<0.000000e+00> : vector<1x32xf32>
    %52 = tpu.matmul %7, %51, %cst_39 {dimension_numbers = #tpu.dot_dimension_numbers<[1], [0], [0], [1], [0, 0, 1, 1], [], []>} : vector<1x8xf32>, vector<8x32xf32>, vector<1x32xf32> -> vector<1x32xf32>
    %c0_40 = arith.constant 0 : index
    %c0_41 = arith.constant 0 : index
    %53 = vector.load %arg16[%c0_40, %c0_41] : memref<1x32xf32, #tpu.memory_space<vmem>>, vector<1x32xf32>
    %54 = arith.addf %52, %53 : vector<1x32xf32>
    %c0_42 = arith.constant 0 : index
    %c0_43 = arith.constant 0 : index
    %55 = vector.load %arg17[%c0_42, %c0_43] : memref<32x8xf32, #tpu.memory_space<vmem>>, vector<32x8xf32>
    %cst_44 = arith.constant dense<0.000000e+00> : vector<32x1xf32>
    %56 = tpu.matmul %55, %9, %cst_44 {dimension_numbers = #tpu.dot_dimension_numbers<[1], [0], [0], [1], [0, 0, 1, 1], [], []>} : vector<32x8xf32>, vector<8x1xf32>, vector<32x1xf32> -> vector<32x1xf32>
    %c0_45 = arith.constant 0 : index
    %c0_46 = arith.constant 0 : index
    %57 = vector.load %arg18[%c0_45, %c0_46] : memref<32x1xf32, #tpu.memory_space<vmem>>, vector<32x1xf32>
    %58 = arith.addf %56, %57 : vector<32x1xf32>
    %cst_47 = arith.constant 1.000000e+00 : f32
    %59 = vector.broadcast %cst_47 : f32 to vector<32x1xf32>
    %60 = arith.addf %58, %59 : vector<32x1xf32>
    %c0_48 = arith.constant 0 : index
    %c0_49 = arith.constant 0 : index
    %61 = vector.load %arg19[%c0_48, %c0_49] : memref<32x16xf32, #tpu.memory_space<vmem>>, vector<32x16xf32>
    %62 = vector.broadcast %60 : vector<32x1xf32> to vector<32x16xf32>
    %63 = arith.mulf %62, %61 : vector<32x16xf32>
    %64 = vector.broadcast %19 : vector<8x1xf32> to vector<8x8xf32>
    %65 = vector.broadcast %13 : vector<1x8xf32> to vector<8x8xf32>
    %66 = arith.mulf %64, %65 : vector<8x8xf32>
    %67 = vector.shape_cast %66 : vector<8x8xf32> to vector<8x8x1xf32>
    %68 = vector.shape_cast %50 : vector<8x8x32xf32> to vector<64x32xf32>
    %cst_50 = arith.constant dense<0.000000e+00> : vector<64x16xf32>
    %69 = tpu.matmul %68, %63, %cst_50 {dimension_numbers = #tpu.dot_dimension_numbers<[1], [0], [0], [1], [0, 0, 1, 1], [], []>} : vector<64x32xf32>, vector<32x16xf32>, vector<64x16xf32> -> vector<64x16xf32>
    %c0_51 = arith.constant 0 : index
    %c0_52 = arith.constant 0 : index
    %70 = vector.load %arg20[%c0_51, %c0_52] : memref<1x16xf32, #tpu.memory_space<vmem>>, vector<1x16xf32>
    %71 = vector.broadcast %70 : vector<1x16xf32> to vector<64x16xf32>
    %72 = arith.addf %69, %71 : vector<64x16xf32>
    %73 = vector.shape_cast %72 : vector<64x16xf32> to vector<8x8x16xf32>
    %74 = vector.broadcast %67 : vector<8x8x1xf32> to vector<8x8x16xf32>
    %75 = arith.mulf %73, %74 : vector<8x8x16xf32>
    %c0_53 = arith.constant 0 : index
    %c0_54 = arith.constant 0 : index
    %c0_55 = arith.constant 0 : index
    %c0_56 = arith.constant 0 : index
    %76 = vector.load %arg24[%c0_53, %c0_54, %c0_55, %c0_56] : memref<1x8x8x16xf32, #tpu.memory_space<vmem>>, vector<1x8x8x16xf32>
    %77 = vector.shape_cast %76 : vector<1x8x8x16xf32> to vector<8x8x16xf32>
    %78 = vector.shape_cast %75 : vector<8x8x16xf32> to vector<1x8x8x16xf32>
    tpu.vector_store %arg24[%c0_53, %c0_54, %c0_55, %c0_56], %78 {strides = array<i32>} : memref<1x8x8x16xf32, #tpu.memory_space<vmem>>, vector<1x8x8x16xf32>,
    %cst_57 = arith.constant dense<0xFF800000> : vector<8x32xf32>
    %79 = vector.multi_reduction <maximumf>, %50, %cst_57 [1] : vector<8x8x32xf32> to vector<8x32xf32>
    %80 = vector.shape_cast %79 : vector<8x32xf32> to vector<8x1x32xf32>
    %81 = vector.broadcast %80 : vector<8x1x32xf32> to vector<8x8x32xf32>
    %82 = arith.subf %50, %81 : vector<8x8x32xf32>
    %83 = math.exp %82 : vector<8x8x32xf32>
    %84 = vector.shape_cast %13 : vector<1x8xf32> to vector<1x8x1xf32>
    %85 = vector.broadcast %84 : vector<1x8x1xf32> to vector<8x8x32xf32>
    %86 = arith.mulf %83, %85 : vector<8x8x32xf32>
    %cst_58 = arith.constant dense<0.000000e+00> : vector<8x32xf32>
    %87 = vector.multi_reduction <add>, %86, %cst_58 [1] : vector<8x8x32xf32> to vector<8x32xf32>
    %88 = vector.shape_cast %37 : vector<8x32xf32> to vector<1x8x32xf32>
    %89 = vector.broadcast %88 : vector<1x8x32xf32> to vector<8x8x32xf32>
    %90 = arith.mulf %86, %89 : vector<8x8x32xf32>
    %cst_59 = arith.constant dense<0.000000e+00> : vector<8x32xf32>
    %91 = vector.multi_reduction <add>, %90, %cst_59 [1] : vector<8x8x32xf32> to vector<8x32xf32>
    %c0_60 = arith.constant 0 : index
    %92 = memref.load %arg2[%c0_60] : memref<1xi32, #tpu.memory_space<smem>>
    %c0_i32 = arith.constant 0 : i32
    %93 = arith.cmpi sgt, %92, %c0_i32 : i32
    %94 = arith.divf %91, %87 : vector<8x32xf32>
    %cst_61 = arith.constant 0.000000e+00 : f32
    %95 = vector.broadcast %cst_61 : f32 to vector<8x32xf32>
    %96 = arith.select %93, %94, %95 : vector<8x32xf32>
    %cst_62 = arith.constant 1.000000e+00 : f32
    %97 = vector.broadcast %cst_62 : f32 to vector<1x32xf32>
    %98 = arith.addf %54, %97 : vector<1x32xf32>
    %99 = vector.broadcast %98 : vector<1x32xf32> to vector<8x32xf32>
    %100 = arith.mulf %99, %96 : vector<8x32xf32>
    %c0_63 = arith.constant 0 : index
    %c0_64 = arith.constant 0 : index
    %101 = vector.load %arg21[%c0_63, %c0_64] : memref<32x32xf32, #tpu.memory_space<vmem>>, vector<32x32xf32>
    %cst_65 = arith.constant dense<0.000000e+00> : vector<8x32xf32>
    %102 = tpu.matmul %100, %101, %cst_65 {dimension_numbers = #tpu.dot_dimension_numbers<[1], [0], [0], [1], [0, 0, 1, 1], [], []>} : vector<8x32xf32>, vector<32x32xf32>, vector<8x32xf32> -> vector<8x32xf32>
    %c0_66 = arith.constant 0 : index
    %c0_67 = arith.constant 0 : index
    %103 = vector.load %arg22[%c0_66, %c0_67] : memref<1x32xf32, #tpu.memory_space<vmem>>, vector<1x32xf32>
    %104 = vector.broadcast %103 : vector<1x32xf32> to vector<8x32xf32>
    %105 = arith.addf %102, %104 : vector<8x32xf32>
    %106 = vector.broadcast %19 : vector<8x1xf32> to vector<8x32xf32>
    %107 = arith.mulf %105, %106 : vector<8x32xf32>
    %c0_68 = arith.constant 0 : index
    %c0_69 = arith.constant 0 : index
    %c0_70 = arith.constant 0 : index
    %108 = vector.load %arg23[%c0_68, %c0_69, %c0_70] : memref<1x8x32xf32, #tpu.memory_space<vmem>>, vector<1x8x32xf32>
    %109 = vector.shape_cast %108 : vector<1x8x32xf32> to vector<8x32xf32>
    %110 = vector.shape_cast %107 : vector<8x32xf32> to vector<1x8x32xf32>
    tpu.vector_store %arg23[%c0_68, %c0_69, %c0_70], %110 {strides = array<i32>} : memref<1x8x32xf32, #tpu.memory_space<vmem>>, vector<1x8x32xf32>,
    %111 = vector.shape_cast %5 : vector<8x8x16xf32> to vector<64x16xf32>
    %cst_71 = arith.constant dense<0.000000e+00> : vector<16xf32>
    %112 = vector.multi_reduction <add>, %111, %cst_71 [0] : vector<64x16xf32> to vector<16xf32>
    %113 = vector.shape_cast %112 : vector<16xf32> to vector<1x16xf32>
    %cst_72 = arith.constant 1.562500e-02 : f32
    %114 = vector.broadcast %cst_72 : f32 to vector<1x16xf32>
    %115 = arith.mulf %113, %114 : vector<1x16xf32>
    %116 = vector.broadcast %115 : vector<1x16xf32> to vector<64x16xf32>
    %117 = arith.subf %111, %116 : vector<64x16xf32>
    %118 = arith.mulf %117, %117 : vector<64x16xf32>
    %cst_73 = arith.constant dense<0.000000e+00> : vector<16xf32>
    %119 = vector.multi_reduction <add>, %118, %cst_73 [0] : vector<64x16xf32> to vector<16xf32>
    %120 = vector.shape_cast %119 : vector<16xf32> to vector<1x16xf32>
    %cst_74 = arith.constant dense<0x7F800000> : vector<16xf32>
    %121 = vector.multi_reduction <minimumf>, %111, %cst_74 [0] : vector<64x16xf32> to vector<16xf32>
    %122 = vector.shape_cast %121 : vector<16xf32> to vector<1x16xf32>
    %cst_75 = arith.constant dense<0xFF800000> : vector<16xf32>
    %123 = vector.multi_reduction <maximumf>, %111, %cst_75 [0] : vector<64x16xf32> to vector<16xf32>
    %124 = vector.shape_cast %123 : vector<16xf32> to vector<1x16xf32>
    %c0_76 = arith.constant 0 : index
    %c0_77 = arith.constant 0 : index
    %c0_78 = arith.constant 0 : index
    %c0_79 = arith.constant 0 : index
    %125 = vector.load %arg25[%c0_76, %c0_77, %c0_78, %c0_79] : memref<1x1x1x64xf32, #tpu.memory_space<vmem>>, vector<1x1x1x16xf32>
    %126 = vector.shape_cast %125 : vector<1x1x1x16xf32> to vector<1x16xf32>
    %127 = vector.shape_cast %113 : vector<1x16xf32> to vector<1x1x1x16xf32>
    tpu.vector_store %arg25[%c0_76, %c0_77, %c0_78, %c0_79], %127 {strides = array<i32>} : memref<1x1x1x64xf32, #tpu.memory_space<vmem>>, vector<1x1x1x16xf32>,
    %c0_80 = arith.constant 0 : index
    %c0_81 = arith.constant 0 : index
    %c0_82 = arith.constant 0 : index
    %c16 = arith.constant 16 : index
    %128 = vector.load %arg25[%c0_80, %c0_81, %c0_82, %c16] : memref<1x1x1x64xf32, #tpu.memory_space<vmem>>, vector<1x1x1x16xf32>
    %129 = vector.shape_cast %128 : vector<1x1x1x16xf32> to vector<1x16xf32>
    %130 = vector.shape_cast %120 : vector<1x16xf32> to vector<1x1x1x16xf32>
    tpu.vector_store %arg25[%c0_80, %c0_81, %c0_82, %c16], %130 {strides = array<i32>} : memref<1x1x1x64xf32, #tpu.memory_space<vmem>>, vector<1x1x1x16xf32>,
    %c0_83 = arith.constant 0 : index
    %c0_84 = arith.constant 0 : index
    %c0_85 = arith.constant 0 : index
    %c32 = arith.constant 32 : index
    %131 = vector.load %arg25[%c0_83, %c0_84, %c0_85, %c32] : memref<1x1x1x64xf32, #tpu.memory_space<vmem>>, vector<1x1x1x16xf32>
    %132 = vector.shape_cast %131 : vector<1x1x1x16xf32> to vector<1x16xf32>
    %133 = vector.shape_cast %122 : vector<1x16xf32> to vector<1x1x1x16xf32>
    tpu.vector_store %arg25[%c0_83, %c0_84, %c0_85, %c32], %133 {strides = array<i32>} : memref<1x1x1x64xf32, #tpu.memory_space<vmem>>, vector<1x1x1x16xf32>,
    %c0_86 = arith.constant 0 : index
    %c0_87 = arith.constant 0 : index
    %c0_88 = arith.constant 0 : index
    %c48 = arith.constant 48 : index
    %134 = vector.load %arg25[%c0_86, %c0_87, %c0_88, %c48] : memref<1x1x1x64xf32, #tpu.memory_space<vmem>>, vector<1x1x1x16xf32>
    %135 = vector.shape_cast %134 : vector<1x1x1x16xf32> to vector<1x16xf32>
    %136 = vector.shape_cast %124 : vector<1x16xf32> to vector<1x1x1x16xf32>
    tpu.vector_store %arg25[%c0_86, %c0_87, %c0_88, %c48], %136 {strides = array<i32>} : memref<1x1x1x64xf32, #tpu.memory_space<vmem>>, vector<1x1x1x16xf32>,
    return
  }
  func.func @transform_0(%arg0: i32, %arg1: i32, %arg2: memref<1xi32, #tpu.memory_space<smem>>) -> (i32, i32, i32) {
    %c0_i32 = arith.constant 0 : i32
    %c0_i32_0 = arith.constant 0 : i32
    %c0_i32_1 = arith.constant 0 : i32
    return %arg0, %c0_i32, %c0_i32_0 : i32, i32, i32
  }
  func.func @transform_1(%arg0: i32, %arg1: i32, %arg2: memref<1xi32, #tpu.memory_space<smem>>) -> (i32, i32, i32, i32) {
    %c0_i32 = arith.constant 0 : i32
    %c0_i32_0 = arith.constant 0 : i32
    %c0_i32_1 = arith.constant 0 : i32
    return %arg0, %arg1, %c0_i32, %c0_i32_0 : i32, i32, i32, i32
  }
  func.func @transform_2(%arg0: i32, %arg1: i32, %arg2: memref<1xi32, #tpu.memory_space<smem>>) -> (i32, i32, i32) {
    %c0_i32 = arith.constant 0 : i32
    %c0_i32_0 = arith.constant 0 : i32
    %c0_i32_1 = arith.constant 0 : i32
    return %arg0, %c0_i32, %c0_i32_0 : i32, i32, i32
  }
  func.func @transform_3(%arg0: i32, %arg1: i32, %arg2: memref<1xi32, #tpu.memory_space<smem>>) -> (i32, i32, i32) {
    %c0_i32 = arith.constant 0 : i32
    %c0_i32_0 = arith.constant 0 : i32
    %c0_i32_1 = arith.constant 0 : i32
    return %arg0, %c0_i32, %c0_i32_0 : i32, i32, i32
  }
  func.func @transform_4(%arg0: i32, %arg1: i32, %arg2: memref<1xi32, #tpu.memory_space<smem>>) -> (i32, i32, i32) {
    %c0_i32 = arith.constant 0 : i32
    %c0_i32_0 = arith.constant 0 : i32
    %c0_i32_1 = arith.constant 0 : i32
    return %arg0, %c0_i32, %c0_i32_0 : i32, i32, i32
  }
  func.func @transform_5(%arg0: i32, %arg1: i32, %arg2: memref<1xi32, #tpu.memory_space<smem>>) -> (i32, i32, i32) {
    %c0_i32 = arith.constant 0 : i32
    %c0_i32_0 = arith.constant 0 : i32
    %c0_i32_1 = arith.constant 0 : i32
    return %arg0, %c0_i32, %c0_i32_0 : i32, i32, i32
  }
  func.func @transform_6(%arg0: i32, %arg1: i32, %arg2: memref<1xi32, #tpu.memory_space<smem>>) -> (i32, i32) {
    %c0_i32 = arith.constant 0 : i32
    %c0_i32_0 = arith.constant 0 : i32
    %c0_i32_1 = arith.constant 0 : i32
    return %c0_i32, %c0_i32_0 : i32, i32
  }
  func.func @transform_7(%arg0: i32, %arg1: i32, %arg2: memref<1xi32, #tpu.memory_space<smem>>) -> (i32, i32) {
    %c0_i32 = arith.constant 0 : i32
    %c0_i32_0 = arith.constant 0 : i32
    %c0_i32_1 = arith.constant 0 : i32
    return %c0_i32, %c0_i32_0 : i32, i32
  }
  func.func @transform_8(%arg0: i32, %arg1: i32, %arg2: memref<1xi32, #tpu.memory_space<smem>>) -> (i32, i32) {
    %c0_i32 = arith.constant 0 : i32
    %c0_i32_0 = arith.constant 0 : i32
    %c0_i32_1 = arith.constant 0 : i32
    return %c0_i32, %c0_i32_0 : i32, i32
  }
  func.func @transform_9(%arg0: i32, %arg1: i32, %arg2: memref<1xi32, #tpu.memory_space<smem>>) -> (i32, i32) {
    %c0_i32 = arith.constant 0 : i32
    %c0_i32_0 = arith.constant 0 : i32
    %c0_i32_1 = arith.constant 0 : i32
    return %c0_i32, %c0_i32_0 : i32, i32
  }
  func.func @transform_10(%arg0: i32, %arg1: i32, %arg2: memref<1xi32, #tpu.memory_space<smem>>) -> (i32, i32) {
    %c0_i32 = arith.constant 0 : i32
    %c0_i32_0 = arith.constant 0 : i32
    %c0_i32_1 = arith.constant 0 : i32
    return %c0_i32, %c0_i32_0 : i32, i32
  }
  func.func @transform_11(%arg0: i32, %arg1: i32, %arg2: memref<1xi32, #tpu.memory_space<smem>>) -> (i32, i32) {
    %c0_i32 = arith.constant 0 : i32
    %c0_i32_0 = arith.constant 0 : i32
    %c0_i32_1 = arith.constant 0 : i32
    return %c0_i32, %c0_i32_0 : i32, i32
  }
  func.func @transform_12(%arg0: i32, %arg1: i32, %arg2: memref<1xi32, #tpu.memory_space<smem>>) -> (i32, i32) {
    %c0_i32 = arith.constant 0 : i32
    %c0_i32_0 = arith.constant 0 : i32
    %c0_i32_1 = arith.constant 0 : i32
    return %c0_i32, %c0_i32_0 : i32, i32
  }
  func.func @transform_13(%arg0: i32, %arg1: i32, %arg2: memref<1xi32, #tpu.memory_space<smem>>) -> (i32, i32) {
    %c0_i32 = arith.constant 0 : i32
    %c0_i32_0 = arith.constant 0 : i32
    %c0_i32_1 = arith.constant 0 : i32
    return %c0_i32, %c0_i32_0 : i32, i32
  }
  func.func @transform_14(%arg0: i32, %arg1: i32, %arg2: memref<1xi32, #tpu.memory_space<smem>>) -> (i32, i32) {
    %c0_i32 = arith.constant 0 : i32
    %c0_i32_0 = arith.constant 0 : i32
    %c0_i32_1 = arith.constant 0 : i32
    return %c0_i32, %c0_i32_0 : i32, i32
  }
  func.func @transform_15(%arg0: i32, %arg1: i32, %arg2: memref<1xi32, #tpu.memory_space<smem>>) -> (i32, i32) {
    %c0_i32 = arith.constant 0 : i32
    %c0_i32_0 = arith.constant 0 : i32
    %c0_i32_1 = arith.constant 0 : i32
    return %c0_i32, %c0_i32_0 : i32, i32
  }
  func.func @transform_16(%arg0: i32, %arg1: i32, %arg2: memref<1xi32, #tpu.memory_space<smem>>) -> (i32, i32) {
    %c0_i32 = arith.constant 0 : i32
    %c0_i32_0 = arith.constant 0 : i32
    %c0_i32_1 = arith.constant 0 : i32
    return %c0_i32, %c0_i32_0 : i32, i32
  }
  func.func @transform_17(%arg0: i32, %arg1: i32, %arg2: memref<1xi32, #tpu.memory_space<smem>>) -> (i32, i32) {
    %c0_i32 = arith.constant 0 : i32
    %c0_i32_0 = arith.constant 0 : i32
    %c0_i32_1 = arith.constant 0 : i32
    return %c0_i32, %c0_i32_0 : i32, i32
  }
  func.func @transform_18(%arg0: i32, %arg1: i32, %arg2: memref<1xi32, #tpu.memory_space<smem>>) -> (i32, i32) {
    %c0_i32 = arith.constant 0 : i32
    %c0_i32_0 = arith.constant 0 : i32
    %c0_i32_1 = arith.constant 0 : i32
    return %c0_i32, %c0_i32_0 : i32, i32
  }
  func.func @transform_19(%arg0: i32, %arg1: i32, %arg2: memref<1xi32, #tpu.memory_space<smem>>) -> (i32, i32) {
    %c0_i32 = arith.constant 0 : i32
    %c0_i32_0 = arith.constant 0 : i32
    %c0_i32_1 = arith.constant 0 : i32
    return %c0_i32, %c0_i32_0 : i32, i32
  }
  func.func @transform_20(%arg0: i32, %arg1: i32, %arg2: memref<1xi32, #tpu.memory_space<smem>>) -> (i32, i32, i32) {
    %c0_i32 = arith.constant 0 : i32
    %c0_i32_0 = arith.constant 0 : i32
    return %arg0, %arg1, %c0_i32 : i32, i32, i32
  }
  func.func @transform_21(%arg0: i32, %arg1: i32, %arg2: memref<1xi32, #tpu.memory_space<smem>>) -> (i32, i32, i32, i32) {
    %c0_i32 = arith.constant 0 : i32
    %c0_i32_0 = arith.constant 0 : i32
    %c0_i32_1 = arith.constant 0 : i32
    return %arg0, %arg1, %c0_i32, %c0_i32_0 : i32, i32, i32, i32
  }
  func.func @transform_22(%arg0: i32, %arg1: i32, %arg2: memref<1xi32, #tpu.memory_space<smem>>) -> (i32, i32, i32, i32) {
    %c0_i32 = arith.constant 0 : i32
    %c0_i32_0 = arith.constant 0 : i32
    %c0_i32_1 = arith.constant 0 : i32
    return %arg0, %arg1, %c0_i32, %c0_i32_0 : i32, i32, i32, i32
  }
}

</mosaic_0001>

<bundles_post_ra>
// kernel: tpu_custom_call.1
= control target key start
LH: loop header
LB: loop body
LE: loop exit
PB: predicated region body
PF: predicated region fallthrough
CT: control target
= control target key end

     0   :  { %s4707_s0 = inlined_call_operand.<no memory space> [shape: s32[1], index: 0, kind: input, shape index: {}]   ;;  %s4708_s1 = inlined_call_operand.hbm [shape: f32[2,8,32], index: 1, kind: input, shape index: {}]   ;;  %s4709_s2 = inlined_call_operand.vmem [shape: f32[2,8,8,16], index: 2, kind: input, shape index: {}]   ;;  %s4710_s3 = inlined_call_operand.hbm [shape: f32[2,1,8], index: 3, kind: input, shape index: {}]   ;;  %s4711_s4 = inlined_call_operand.vmem [shape: f32[2,8,1], index: 4, kind: input, shape index: {}]   ;;  %s4712_s5 = inlined_call_operand.vmem [shape: f32[2,8,1], index: 5, kind: input, shape index: {}]   ;;  %s4713_s6 = inlined_call_operand.hbm [shape: f32[2,1,8], index: 6, kind: input, shape index: {}]   ;;  %s4714_s7 = inlined_call_operand.vmem [shape: f32[32,32], index: 7, kind: input, shape index: {}]   ;;  %s4715_s8 = inlined_call_operand.vmem [shape: f32[1,32], index: 8, kind: input, shape index: {}]   ;;  %s4716_s9 = inlined_call_operand.hbm [shape: f32[32,64], index: 9, kind: input, shape index: {}]   ;;  %s4717_s10 = inlined_call_operand.hbm [shape: f32[1,64], index: 10, kind: input, shape index: {}]   ;;  %s4718_s11 = inlined_call_operand.hbm [shape: f32[16,32], index: 11, kind: input, shape index: {}]   ;;  %s4719_s12 = inlined_call_operand.hbm [shape: f32[1,32], index: 12, kind: input, shape index: {}]   ;;  %s4720_s13 = inlined_call_operand.hbm [shape: f32[8,32], index: 13, kind: input, shape index: {}]   ;;  %s4721_s14 = inlined_call_operand.hbm [shape: f32[1,32], index: 14, kind: input, shape index: {}]   ;;  %s4722_s15 = inlined_call_operand.vmem [shape: f32[32,8], index: 15, kind: input, shape index: {}]   ;;  %s4723_s16 = inlined_call_operand.vmem [shape: f32[32,1], index: 16, kind: input, shape index: {}]   ;;  %s4724_s17 = inlined_call_operand.vmem [shape: f32[32,16], index: 17, kind: input, shape index: {}]   ;;  %s4725_s18 = inlined_call_operand.vmem [shape: f32[1,16], index: 18, kind: input, shape index: {}]   ;;  %s4726_s19 = inlined_call_operand.vmem [shape: f32[32,32], index: 19, kind: input, shape index: {}]   ;;  %s4727_s20 = inlined_call_operand.vmem [shape: f32[1,32], index: 20, kind: input, shape index: {}]   ;;  %s4728_s21 = inlined_call_operand.hbm [shape: f32[2,8,32], index: 21, kind: output, shape index: {0}]   ;;  %s4729_s22 = inlined_call_operand.hbm [shape: f32[2,8,8,16], index: 22, kind: output, shape index: {1}]   ;;  %s4730_s23 = inlined_call_operand.hbm [shape: f32[2,1,1,64], index: 23, kind: output, shape index: {2}]  }
   0x1   :  { %4774 = sst [smem:[#allocation44_spill]] %s4707_s0 }
   0x2   :  { %4775 = sst [smem:[#allocation45_spill]] %s4708_s1  ;;  %s4794_s24 = sld [smem:[#allocation44_spill]] }
   0x3   :  { %4776 = sst [smem:[#allocation46_spill]] %s4709_s2 }
   0x4   :  { %4777 = sst [smem:[#allocation47_spill]] %s4710_s3 }
   0x5   :  { %4778 = sst [smem:[#allocation48_spill]] %s4711_s4 }
   0x6   :  { %4779 = sst [smem:[#allocation49_spill]] %s4712_s5 }
   0x7   :  { %4780 = sst [smem:[#allocation50_spill]] %s4713_s6 }
   0x8   :  { %4781 = sst [smem:[#allocation51_spill]] %s4714_s7 }
   0x9   :  { %4782 = sst [smem:[#allocation52_spill]] %s4715_s8 }
   0xa   :  { %4783 = sst [smem:[#allocation53_spill]] %s4716_s9 }
   0xb   :  { %4784 = sst [smem:[#allocation54_spill]] %s4718_s11 }
   0xc   :  { %4785 = sst [smem:[#allocation55_spill]] %s4720_s13 }
   0xd   :  { %4786 = sst [smem:[#allocation56_spill]] %s4723_s16 }
   0xe   :  { %4787 = sst [smem:[#allocation57_spill]] %s4724_s17 }
   0xf   :  { %4788 = sst [smem:[#allocation58_spill]] %s4725_s18 }
  0x10   :  { %4789 = sst [smem:[#allocation59_spill]] %s4726_s19 }
  0x11   :  { %4790 = sst [smem:[#allocation60_spill]] %s4727_s20 }
  0x12   :  { %4791 = sst [smem:[#allocation61_spill]] %s4728_s21 }
  0x13   :  { %4792 = sst [smem:[#allocation62_spill]] %s4729_s22 }
  0x14   :  { %4793 = sst [smem:[#allocation63_spill]] %s4730_s23 }
  0x15   :  { %29 = sst [smem:[#allocation3]] %s4794_s24 }
  0x16   :  { %30 = vsyncpa [#allocation5], 0 }
  0x17   :  { %32 = vsyncpa [#allocation5 + $0x1], 0 }
  0x18   :  { %33 = vsyncpa [#allocation8], 0 }
  0x19   :  { %35 = vsyncpa [#allocation8 + $0x1], 0 }
  0x1a   :  { %36 = vsyncpa [#allocation11], 0 }
  0x1b   :  { %37 = vsyncpa [#allocation14], 0 }
  0x1c   :  { %38 = vsyncpa [#allocation17], 0 }
  0x1d   :  { %39 = vsyncpa [#allocation6], 0 }
  0x1e   :  { %41 = vsyncpa [#allocation6 + $0x1], 0 }
  0x1f   :  { %42 = vsyncpa [#allocation21], 0 }
  0x20   :  { %44 = vsyncpa [#allocation21 + $0x1], 0  ;;  %s3629_s25 = smov 0   ;;  %s3631_s5 = smov 0  }
  0x21   :  { %s3633_s1 = smov 0   ;;  %s3635_s26 = smov 0  }
  0x22   :  { %s3637_s2 = smov 0   ;;  %s3639_s6 = smov 0  }
  0x23 LB: > { %4795 = sst [smem:[#allocation30_spill]] %s3467_s1  ;;  %s3660_s27 = sadd.s32 4294967295, %s3479_s6   ;;  %s3479_s6 = sphi %s3639_s6, %s50_s6   ;;  %s3475_s2 = sphi %s3637_s2, %s4889_s2   ;;  %s3471_s26 = sphi %s3635_s26, %s4888_s26   ;;  %s3467_s1 = sphi %s3633_s1, %s4884_s1   ;;  %s3463_s5 = sphi %s3631_s5, %s4887_s5   ;;  %s3459_s25 = sphi %s3629_s25, %s4886_s25  }
  0x24   : > { %4796 = sst [smem:[#allocation31_spill]] %s3479_s6  ;;  %p2651_p0 = scmp.ge.s32.totalorder %s3479_s6, 1 }
  0x25   : > { %p4741_p1 = scmp.eq.s32.totalorder %s3660_s27, 0  ;;  %p603_p2 = scmp.lt.s32.totalorder %s3479_s6, 3 }
  0x26   : > { %s3481_s28 = smov [#allocation10]   ;;  %s3482_s0 = smov [#allocation13]  }
  0x27   : > { %p3665_p3 = pnand %p2651_p0, %p603_p2  ;;  %s621_s29 = sshll.u32 %s3481_s28, 4  ;;  %s3669_s29 = int_to_ptr.vmem [resolvable:$true] %s621_s29 }
  0x28   : > { %s645_s4 = sshll.u32 %s3482_s0, 4  ;;  %s3483_s30 = smov [#allocation16]   ;;  %s3680_s4 = int_to_ptr.vmem [resolvable:$true] %s645_s4 }
  0x29   : > { %s4797_s7 = scalar_select %p3665_p3, 1, 0 }
  0x2a   : > { %p2909_p4 = pneg %p3665_p3  ;;  %s3682_s24 = sshll.u32 %s3483_s30, 4  ;;  %s671_s24 = int_to_ptr.vmem [resolvable:$true] %s3682_s24 }
  0x2b   : > { %s4799_s9 = sld [smem:[#allocation53_spill]] }
  0x2c   : > { %p3676_p6 = pnand %p2909_p4, %p4741_p1 }
  0x2e   : > { %s4798_s3 = scalar_select %p3676_p6, 1, 0 }
  0x2f   : > { %p3692_p8 = pneg %p3676_p6 }
  0x31   : > { %s3063_s20 = scalar_lea.hbm %s4799_s9, 512 }
  0x32   : > { %p3064_p7 = scmp.ne.s32.totalorder %s4799_s9, %s3063_s20  ;;  %p3070_p11 = scmp.lt.u32.totalorder %s3063_s20, %s4799_s9 }
  0x33   : > { %s4800_s18 = scalar_select %p3692_p8, 1, 0 }
  0x34   : > { %p3066_p9 = pnand %p3692_p8, %p3064_p7 }
  0x36   : > { %p3067_p10 = pneg %p3066_p9 }
  0x38   : > { %p3072_p12 = pnand %p3070_p11, %p3067_p10 }
  0x3a   : > { %3075 = shalt.err (!%p3072_p12)
}
  0x3b   : > { %s3076_s21 = scalar_lea.vmem %s3669_s29, 512  ;;  %p3084_p4 = scmp.lt.s32.totalorder %s3669_s29, %s3669_s29 }
  0x3c   : > { %p3077_p13 = scmp.ne.s32.totalorder %s3669_s29, %s3076_s21  ;;  %p3085_p5 = scmp.lt.s32.totalorder %s3076_s21, %s3076_s21 }
  0x3e   : > { %p3079_p0 = pnand %p3077_p13, %p3692_p8  ;;  %p3086_p7 = por %p3085_p5, %p3084_p4 }
  0x40   : > { %p3080_p2 = pneg %p3079_p0 }
  0x42   : > { %p3087_p9 = pnand %p3086_p7, %p3080_p2 }
  0x44   : > { %3090 = shalt.err (!%p3087_p9)
}
  0x45   : > { %s3484_s22 = smov 128   ;;  %s3485_s20 = smov 8  }
  0x46   : > { %2912 = dma.hbm_to_vmem [thread:$0]  (!%p3676_p6), %s4799_s9, 512, %s3669_s29, [#allocation11], %s3484_s22, %s3484_s22, %s3485_s20  }
  0x47   : > { %s4801_s11 = sld [smem:[#allocation54_spill]] }
  0x4d   : > { %s3091_s17 = scalar_lea.hbm %s4801_s11, 256 }
  0x4e   : > { %p3092_p5 = scmp.ne.s32.totalorder %s4801_s11, %s3091_s17  ;;  %p3098_p12 = scmp.lt.u32.totalorder %s3091_s17, %s4801_s11 }
  0x50   : > { %p3094_p10 = pnand %p3092_p5, %p3692_p8 }
  0x52   : > { %p3095_p11 = pneg %p3094_p10 }
  0x54   : > { %p3100_p13 = pnand %p3098_p12, %p3095_p11 }
  0x56   : > { %3103 = shalt.err (!%p3100_p13)
}
  0x57   : > { %s3104_s29 = scalar_lea.vmem %s3680_s4, 256  ;;  %p3112_p7 = scmp.lt.s32.totalorder %s3680_s4, %s3680_s4 }
  0x58   : > { %p3105_p0 = scmp.ne.s32.totalorder %s3680_s4, %s3104_s29  ;;  %p3113_p9 = scmp.lt.s32.totalorder %s3104_s29, %s3104_s29 }
  0x5a   : > { %p3107_p2 = pnand %p3105_p0, %p3692_p8  ;;  %p3114_p5 = por %p3113_p9, %p3112_p7 }
  0x5c   : > { %p3108_p4 = pneg %p3107_p2 }
  0x5e   : > { %p3115_p10 = pnand %p3114_p5, %p3108_p4 }
  0x60   : > { %3118 = shalt.err (!%p3115_p10)
}
  0x61   : > { %2918 = dma.hbm_to_vmem [thread:$0]  (!%p3676_p6), %s4801_s11, 256, %s3680_s4, [#allocation14], %s3484_s22, %s3484_s22, %s3485_s20  }
  0x62   : > { %s4802_s13 = sld [smem:[#allocation55_spill]] }
  0x68   : > { %s3119_s23 = scalar_lea.hbm %s4802_s13, 128 }
  0x69   : > { %p3120_p11 = scmp.ne.s32.totalorder %s4802_s13, %s3119_s23  ;;  %p3126_p0 = scmp.lt.u32.totalorder %s3119_s23, %s4802_s13 }
  0x6b   : > { %p3122_p12 = pnand %p3120_p11, %p3692_p8 }
  0x6d   : > { %p3123_p13 = pneg %p3122_p12 }
  0x6f   : > { %p3128_p2 = pnand %p3126_p0, %p3123_p13 }
  0x71   : > { %3131 = shalt.err (!%p3128_p2)
}
  0x72   : > { %s3132_s29 = scalar_lea.vmem %s671_s24, 128  ;;  %p3140_p5 = scmp.lt.s32.totalorder %s671_s24, %s671_s24 }
  0x73   : > { %p3133_p4 = scmp.ne.s32.totalorder %s671_s24, %s3132_s29  ;;  %p3141_p10 = scmp.lt.s32.totalorder %s3132_s29, %s3132_s29 }
  0x75   : > { %p3135_p7 = pnand %p3133_p4, %p3692_p8  ;;  %p3142_p1 = por %p3141_p10, %p3140_p5 }
  0x77   : > { %p3136_p9 = pneg %p3135_p7 }
  0x79   : > { %p3143_p3 = pnand %p3142_p1, %p3136_p9 }
  0x7b   : > { %3146 = shalt.err (!%p3143_p3)
}
  0x7c   : > { %2924 = dma.hbm_to_vmem [thread:$0]  (!%p3676_p6), %s4802_s13, 128, %s671_s24, [#allocation17]  }
  0x7d   : > { %s4743_s20 = sadd.s32 4294967294, %s3479_s6   ;;  %s62_s8 = sadd.s32 1, %s3475_s2 }
  0x7e   : > { %s69_s16 = sadd.s32 1, %s3467_s1  ;;  %p64_p1 = scmp.ge.s32.totalorder %s62_s8, 2 }
  0x7f   : > { %p76_p3 = scmp.ne.s32.totalorder %s3467_s1, %s3463_s5  ;;  %p77_p11 = scmp.eq.s32.totalorder %s3479_s6, 0 }
  0x80   : > { %p82_p12 = scmp.ne.s32.totalorder %s3463_s5, %s3459_s25  ;;  %s4891_s8 = smov (%p64_p1, %s62_s8), 0 }
  0x81   : > { %4803 = sst [smem:[#allocation32_spill]] %s4891_s8  ;;  %p78_p13 = por %p77_p11, %p76_p3 }
  0x82   : > { %p4804_p0 = scmp.eq.s32.totalorder %s3660_s27, 0  ;;  %s66_s17 = ssub.s32 %s3475_s2, %s4891_s8 }
  0x83   : > { %p534_p4 = scmp.eq.s32.totalorder %s3660_s27, 1  ;;  %p67_p7 = scmp.eq.s32.totalorder %s66_s17, 0 }
  0x84   : > { %p3767_p2 = por %p4804_p0, %p82_p12  ;;  %p540_p9 = scmp.eq.s32.totalorder %s4743_s20, 1 }
  0x85   : > { %p3776_p5 = por %p534_p4, %p76_p3  ;;  %p2954_p10 = scmp.lt.s32.totalorder %s3479_s6, 2 }
  0x86   : > { %s4805_s24 = scalar_select %p3767_p2, 1, 0 }
  0x87   : > { %s4806_s19 = scalar_select %p3776_p5, 1, 0 }
  0x88   : > { %s3782_s23 = scalar_select %p67_p7, %s3467_s1, %s69_s16  }
  0x89   : > { %p3784_p1 = por %p540_p9, %p82_p12  ;;  %s3789_s0 = sand.u32 1, %s3467_s1  }
  0x8a   : > { %4807 = sst [smem:[#allocation33_spill]] %s3782_s23  ;;  %p3791_p11 = pnand %p2954_p10, %p78_p13 }
  0x8b   : > { %s4808_s28 = scalar_select %p3784_p1, 1, 0 }
  0x8c   : > { %s4809_s30 = scalar_select %p3791_p11, 1, 0 }
  0x8d   : > { %s741_s21 = sand.u32 1, %s3479_s6   ;;  %s4745_s29 = sshll.u32 %s3475_s2, 4 }
  0x8e   : > { %s4810_s17 = sld [smem:[#allocation47_spill]]  ;;  %s744_s20 = scalar_lea.vmem [#allocation7], %s3789_s0 }
  0x8f   : > { %s751_s9 = sshll.u32 %s744_s20, 4  ;;  %s3807_s11 = scalar_lea.sflag [#allocation8], %s741_s21  ;;  %s3805_s9 = int_to_ptr.vmem [resolvable:$true] %s751_s9 }
  0x90   : > { %p3813_p12 = pneg %p3791_p11 }
  0x92   : > { %s4811_s8 = scalar_select %p3813_p12, 1, 0 }
  0x94   : > { %s3802_s16 = scalar_lea.hbm %s4810_s17, %s4745_s29  ;;  %s3152_s29 = scalar_lea.hbm %s4810_s17, 32 }
  0x95   : > { %s3147_s13 = scalar_lea.hbm %s3802_s16, 16  ;;  %p3153_p4 = scmp.lt.u32.totalorder %s3802_s16, %s4810_s17 }
  0x96   : > { %p3148_p3 = scmp.ne.s32.totalorder %s3802_s16, %s3147_s13  ;;  %p3154_p7 = scmp.lt.u32.totalorder %s3152_s29, %s3147_s13 }
  0x97   : > { %p3156_p10 = scmp.lt.u32.totalorder %s3147_s13, %s3802_s16 }
  0x98   : > { %p3150_p13 = pnand %p3813_p12, %p3148_p3  ;;  %p3155_p9 = por %p3154_p7, %p3153_p4 }
  0x9a   : > { %p3151_p0 = pneg %p3150_p13  ;;  %p3157_p1 = por %p3156_p10, %p3155_p9 }
  0x9c   : > { %p3158_p5 = pnand %p3157_p1, %p3151_p0 }
  0x9e   : > { %3161 = shalt.err (!%p3158_p5)
}
  0x9f   : > { %s3162_s21 = scalar_lea.vmem %s3805_s9, 16  ;;  %s3486_s4 = smov [#allocation7]  }
  0xa0   : > { %p3163_p3 = scmp.ne.s32.totalorder %s3805_s9, %s3162_s21  ;;  %s3167_s22 = sshll.u32 %s3486_s4, 4  ;;  %s3168_s22 = int_to_ptr.vmem [resolvable:$false] %s3167_s22 }
  0xa1   : > { %s3169_s23 = scalar_lea.vmem %s3168_s22, 32  ;;  %p3170_p6 = scmp.lt.s32.totalorder %s3805_s9, %s3168_s22 }
  0xa2   : > { %p3165_p13 = pnand %p3163_p3, %p3813_p12  ;;  %p3171_p8 = scmp.lt.s32.totalorder %s3169_s23, %s3162_s21 }
  0xa4   : > { %p3166_p2 = pneg %p3165_p13  ;;  %p3172_p4 = por %p3171_p8, %p3170_p6 }
  0xa6   : > { %p3173_p7 = pnand %p3172_p4, %p3166_p2 }
  0xa8   : > { %3176 = shalt.err (!%p3173_p7)
}
  0xa9   : > { %2934 = dma.hbm_to_vmem [thread:$0]  (!%p3791_p11), %s3802_s16, 16, %s3805_s9, %s3807_s11  }
  0xaa   : > { %s3487_s13 = smov [#allocation12]   ;;  %s3488_s20 = smov [#allocation15]  }
  0xab   : > { %s635_s29 = sshll.u32 %s3487_s13, 4  ;;  %s659_s17 = sshll.u32 %s3488_s20, 4  ;;  %s636_s29 = int_to_ptr.vmem [resolvable:$true] %s635_s29  ;;  %s3837_s17 = int_to_ptr.vmem [resolvable:$true] %s659_s17 }
  0xac   : > { %s3177_s21 = scalar_lea.hbm %s4717_s10, 16  ;;  %p4812_p8 = scmp.ne.s32.totalorder %s4800_s18, 0 }
  0xad   : > { %p3178_p6 = scmp.ne.s32.totalorder %s4717_s10, %s3177_s21  ;;  %p3184_p1 = scmp.lt.u32.totalorder %s3177_s21, %s4717_s10 }
  0xaf   : > { %p3180_p2 = pnand %p3178_p6, %p4812_p8 }
  0xb1   : > { %p3181_p5 = pneg %p3180_p2 }
  0xb3   : > { %p3186_p0 = pnand %p3184_p1, %p3181_p5 }
  0xb5   : > { %3189 = shalt.err (!%p3186_p0)
}
  0xb6   : > { %s3190_s16 = scalar_lea.vmem %s636_s29, 16  ;;  %s3197_s13 = scalar_lea.vmem %s636_s29, 32 }
  0xb7   : > { %p3191_p9 = scmp.ne.s32.totalorder %s636_s29, %s3190_s16  ;;  %p3198_p13 = scmp.lt.s32.totalorder %s636_s29, %s636_s29 }
  0xb8   : > { %p3199_p4 = scmp.lt.s32.totalorder %s3197_s13, %s3190_s16 }
  0xb9   : > { %p3193_p10 = pnand %p3191_p9, %p4812_p8 }
  0xba   : > { %p3200_p7 = por %p3199_p4, %p3198_p13 }
  0xbb   : > { %p3194_p3 = pneg %p3193_p10 }
  0xbd   : > { %p3201_p11 = pnand %p3200_p7, %p3194_p3 }
  0xbf   : > { %3204 = shalt.err (!%p3201_p11)
}
  0xc0   : > { %p4813_p6 = scmp.ne.s32.totalorder %s4798_s3, 0  ;;  %s3205_s22 = scalar_lea.hbm %s4719_s12, 16 }
  0xc1   : > { %p3206_p2 = scmp.ne.s32.totalorder %s4719_s12, %s3205_s22  ;;  %p3212_p11 = scmp.lt.u32.totalorder %s3205_s22, %s4719_s12 }
  0xc2   : > { %2915 = dma.hbm_to_vmem [thread:$0]  (!%p4813_p6), %s4717_s10, 16, %s636_s29, [#allocation11]  }
  0xc3   : > { %p3208_p5 = pnand %p3206_p2, %p4812_p8 }
  0xc5   : > { %p3209_p1 = pneg %p3208_p5 }
  0xc7   : > { %p3214_p0 = pnand %p3212_p11, %p3209_p1 }
  0xc9   : > { %3217 = shalt.err (!%p3214_p0)
}
  0xca   : > { %s3218_s29 = scalar_lea.vmem %s3837_s17, 16  ;;  %s3225_s13 = scalar_lea.vmem %s3837_s17, 32 }
  0xcb   : > { %p3219_p9 = scmp.ne.s32.totalorder %s3837_s17, %s3218_s29  ;;  %p3226_p13 = scmp.lt.s32.totalorder %s3837_s17, %s3837_s17 }
  0xcc   : > { %p3227_p4 = scmp.lt.s32.totalorder %s3225_s13, %s3218_s29 }
  0xcd   : > { %p3221_p10 = pnand %p3219_p9, %p4812_p8 }
  0xce   : > { %p3228_p7 = por %p3227_p4, %p3226_p13 }
  0xcf   : > { %p3222_p3 = pneg %p3221_p10 }
  0xd1   : > { %p3229_p2 = pnand %p3228_p7, %p3222_p3 }
  0xd3   : > { %3232 = shalt.err (!%p3229_p2)
}
  0xd4   : > { %2921 = dma.hbm_to_vmem [thread:$0]  (!%p4813_p6), %s4719_s12, 16, %s3837_s17, [#allocation14]  }
  0xd5   : > { %s3489_s6 = smov [#allocation18]   ;;  %s2659_s22 = sshll.u32 %s3789_s0, 3 }
  0xd6   : > { %s681_s4 = sshll.u32 %s3489_s6, 4  ;;  %s3233_s9 = scalar_lea.hbm %s4721_s14, 16  ;;  %s682_s4 = int_to_ptr.vmem [resolvable:$true] %s681_s4 }
  0xd7   : > { %p3234_p5 = scmp.ne.s32.totalorder %s4721_s14, %s3233_s9  ;;  %p3240_p0 = scmp.lt.u32.totalorder %s3233_s9, %s4721_s14 }
  0xd9   : > { %p3236_p1 = pnand %p3234_p5, %p4812_p8 }
  0xdb   : > { %p3237_p11 = pneg %p3236_p1 }
  0xdd   : > { %p3242_p9 = pnand %p3240_p0, %p3237_p11 }
  0xdf   : > { %3245 = shalt.err (!%p3242_p9)
}
  0xe0   : > { %s3246_s17 = scalar_lea.vmem %s682_s4, 16  ;;  %s3253_s20 = scalar_lea.vmem %s682_s4, 32 }
  0xe1   : > { %p3247_p10 = scmp.ne.s32.totalorder %s682_s4, %s3246_s17  ;;  %p3254_p4 = scmp.lt.s32.totalorder %s682_s4, %s682_s4 }
  0xe2   : > { %p3255_p7 = scmp.lt.s32.totalorder %s3253_s20, %s3246_s17 }
  0xe3   : > { %p3249_p3 = pnand %p3247_p10, %p4812_p8 }
  0xe4   : > { %p3256_p2 = por %p3255_p7, %p3254_p4 }
  0xe5   : > { %p3250_p13 = pneg %p3249_p3 }
  0xe7   : > { %p3257_p12 = pnand %p3256_p2, %p3250_p13 }
  0xe9   : > { %3260 = shalt.err (!%p3257_p12)
}
  0xea   : > { %2927 = dma.hbm_to_vmem [thread:$0]  (!%p4813_p6), %s4721_s14, 16, %s682_s4, [#allocation17]  }
  0xeb   : > { %s2660_s23 = sshll.u32 %s3475_s2, 7  ;;  %s714_s9 = scalar_lea.vmem [#allocation4], %s2659_s22 }
  0xec   : > { %s721_s18 = sshll.u32 %s714_s9, 4  ;;  %s4814_s13 = sld [smem:[#allocation45_spill]]  ;;  %s722_s18 = int_to_ptr.vmem [resolvable:$true] %s721_s18 }
  0xed   : > { %s711_s3 = scalar_lea.sflag [#allocation5], %s3789_s0  ;;  %p4815_p8 = scmp.ne.s32.totalorder %s4811_s8, 0 }
  0xf2   : > { %s3904_s1 = scalar_lea.hbm %s4814_s13, %s2660_s23  ;;  %s3266_s22 = scalar_lea.hbm %s4814_s13, 256 }
  0xf3   : > { %s3261_s17 = scalar_lea.hbm %s3904_s1, 128  ;;  %p3267_p6 = scmp.lt.u32.totalorder %s3904_s1, %s4814_s13 }
  0xf4   : > { %p3262_p12 = scmp.ne.s32.totalorder %s3904_s1, %s3261_s17  ;;  %p3268_p11 = scmp.lt.u32.totalorder %s3266_s22, %s3261_s17 }
  0xf5   : > { %p3270_p9 = scmp.lt.u32.totalorder %s3261_s17, %s3904_s1 }
  0xf6   : > { %p3264_p5 = pnand %p3262_p12, %p4815_p8  ;;  %p3269_p0 = por %p3268_p11, %p3267_p6 }
  0xf8   : > { %p3265_p1 = pneg %p3264_p5  ;;  %p3271_p10 = por %p3270_p9, %p3269_p0 }
  0xfa   : > { %p3272_p3 = pnand %p3271_p10, %p3265_p1 }
  0xfc   : > { %3275 = shalt.err (!%p3272_p3)
}
  0xfd   : > { %s3276_s23 = scalar_lea.vmem %s722_s18, 128  ;;  %s3490_s9 = smov [#allocation4]  }
  0xfe   : > { %p3277_p13 = scmp.ne.s32.totalorder %s722_s18, %s3276_s23  ;;  %s3281_s16 = sshll.u32 %s3490_s9, 4  ;;  %s3282_s16 = int_to_ptr.vmem [resolvable:$false] %s3281_s16 }
  0xff   : > { %s3283_s29 = scalar_lea.vmem %s3282_s16, 256  ;;  %p3284_p2 = scmp.lt.s32.totalorder %s722_s18, %s3282_s16 }
 0x100   : > { %p3279_p4 = pnand %p3277_p13, %p4815_p8  ;;  %p3285_p12 = scmp.lt.s32.totalorder %s3283_s29, %s3276_s23 }
 0x102   : > { %p3280_p7 = pneg %p3279_p4  ;;  %p3286_p5 = por %p3285_p12, %p3284_p2 }
 0x104   : > { %p3287_p6 = pnand %p3286_p5, %p3280_p7 }
 0x106   : > { %3290 = shalt.err (!%p3287_p6)
}
 0x107   : > { %p4816_p11 = scmp.ne.s32.totalorder %s4809_s30, 0  ;;  %s4817_s17 = sshll.u32 %s3475_s2, 4 }
 0x108   : > { %s4818_s22 = sld [smem:[#allocation50_spill]]  ;;  %s775_s21 = scalar_lea.vmem [#allocation9], %s3789_s0 }
 0x109   : > { %2931 = dma.hbm_to_vmem [thread:$0]  (!%p4816_p11), %s3904_s1, 128, %s722_s18, %s711_s3  }
 0x10a   : > { %s782_s23 = sshll.u32 %s775_s21, 4  ;;  %s783_s23 = int_to_ptr.vmem [resolvable:$true] %s782_s23 }
 0x10e   : > { %s3929_s6 = scalar_lea.hbm %s4818_s22, %s4817_s17  ;;  %s3296_s1 = scalar_lea.hbm %s4818_s22, 32 }
 0x10f   : > { %s3291_s9 = scalar_lea.hbm %s3929_s6, 16  ;;  %p3297_p10 = scmp.lt.u32.totalorder %s3929_s6, %s4818_s22 }
 0x110   : > { %p3292_p1 = scmp.ne.s32.totalorder %s3929_s6, %s3291_s9  ;;  %p3298_p3 = scmp.lt.u32.totalorder %s3296_s1, %s3291_s9 }
 0x111   : > { %p3300_p4 = scmp.lt.u32.totalorder %s3291_s9, %s3929_s6 }
 0x112   : > { %p3294_p0 = pnand %p3292_p1, %p4815_p8  ;;  %p3299_p13 = por %p3298_p3, %p3297_p10 }
 0x114   : > { %p3295_p9 = pneg %p3294_p0  ;;  %p3301_p7 = por %p3300_p4, %p3299_p13 }
 0x116   : > { %p3302_p2 = pnand %p3301_p7, %p3295_p9 }
 0x118   : > { %3305 = shalt.err (!%p3302_p2)
}
 0x119   : > { %s3306_s0 = scalar_lea.vmem %s783_s23, 16  ;;  %s3491_s17 = smov [#allocation9]  }
 0x11a   : > { %p3307_p12 = scmp.ne.s32.totalorder %s783_s23, %s3306_s0  ;;  %s3311_s4 = sshll.u32 %s3491_s17, 4  ;;  %s3312_s4 = int_to_ptr.vmem [resolvable:$false] %s3311_s4 }
 0x11b   : > { %s3313_s20 = scalar_lea.vmem %s3312_s4, 32  ;;  %p3314_p1 = scmp.lt.s32.totalorder %s783_s23, %s3312_s4 }
 0x11c   : > { %p3309_p5 = pnand %p3307_p12, %p4815_p8  ;;  %p3315_p0 = scmp.lt.s32.totalorder %s3313_s20, %s3306_s0 }
 0x11e   : > { %p3310_p6 = pneg %p3309_p5  ;;  %p3316_p11 = por %p3315_p0, %p3314_p1 }
 0x120   : > { %p3317_p3 = pnand %p3316_p11, %p3310_p6 }
 0x122   : > { %3320 = shalt.err (!%p3317_p3)
}
 0x123   : > { %p4819_p10 = scmp.ne.s32.totalorder %s4809_s30, 0  ;;  %p4820_p9 = scmp.ne.s32.totalorder %s4797_s7, 0 }
 0x125   : > { %2937 = dma.hbm_to_vmem [thread:$0]  (!%p4819_p10), %s3929_s6, 16, %s783_s23, %s3807_s11  }
 0x126   : > { %791 = sbr.rel (%p4820_p9) target bundleno = 987 (0x3db), region = 100 }
 0x12d   : > { %s3953_s8 = sand.u32 1, %s3463_s5   ;;  %p4821_p8 = scmp.ne.s32.totalorder %s4805_s24, 0 }
 0x12e   : > { %s4760_s21 = sshll.u32 %s3953_s8, 3  ;;  %s794_s9 = scalar_lea.sflag [#allocation5], %s3953_s8 }
 0x12f   : > { %s3959_s16 = scalar_lea.vmem [#allocation4], %s4760_s21 }
 0x130   : > { %3430 = dma.done.wait (%p4821_p8), %s794_s9, 128  }
 0x131   : > { %3432 = vsyncadd (%p4821_p8), %s794_s9, 4294967168  ;;  %s4761_s11 = sand.u32 1, %s3660_s27  }
 0x132   : > { %s803_s7 = scalar_lea.sflag [#allocation8], %s4761_s11 }
 0x133   : > { %3434 = dma.done.wait (%p4821_p8), %s803_s7, 32  }
 0x134   : > { %3436 = vsyncadd (%p4821_p8), %s803_s7, 4294967264  ;;  %s813_s6 = scalar_lea.vmem [#allocation9], %s3953_s8  ;;  %p4822_p11 = scmp.eq.s32.totalorder %s3660_s27, 0 }
 0x136   : > { %3438 = dma.done.wait (%p4822_p11), [#allocation11], 528   ;;  %p4823_p13 = pmov %p4822_p11 }
 0x137   : > { %p4824_p4 = pmov %p4822_p11 }
 0x138   : > { %3440 = vsyncadd (%p4823_p13), [#allocation11], 4294966768 }
 0x139   : > { %3442 = dma.done.wait (%p4824_p4), [#allocation14], 272   ;;  %p4825_p7 = pmov %p4824_p4 }
 0x13a   : > { %p4826_p2 = pmov %p4824_p4 }
 0x13b   : > { %3444 = vsyncadd (%p4825_p7), [#allocation14], 4294967024 }
 0x13c   : > { %3446 = dma.done.wait (%p4826_p2), [#allocation17], 144   ;;  %p4827_p12 = pmov %p4826_p2 }
 0x13d   : > { %v3492_v0 = vmov 0.0|0.0   ;;  %vm3493_vm0 = vmmov 0   ;;  %v3494_v1 = vmov 0.0   ;;  %p933_p5 = scmp.lt.s32.totalorder %s3471_s26, 1  ;;  %v3495_v2 = vmov 0   ;;  %s4828_s1 = sld [smem:[#allocation51_spill]] }
 0x13e   : > { %3448 = vsyncadd (%p4827_p12), [#allocation17], 4294967152  ;;  %2843 = vmatprep.subr.bf16.mxu0 %v3492_v0  ;;  %2849 = vmatprep.subr.bf16.mxu1 %v3492_v0  ;;  %v1061_v5 = vld [vmem:[#allocation10] sm:$0xff]  ;;  %v1062_v7 = vld [vmem:[#allocation10 + $0x8] sm:$0xff]  ;;  %s4830_s29 = sld [smem:[#allocation46_spill]]  ;;  %s4831_s20 = sld [smem:[#allocation49_spill]]  ;;  %v1295_v39 = vlaneseq }
 0x13f   : > { %2769 = vmatprep.mubr.msk.f32.mxu0 %vm3493_vm0, %v3494_v1  ;;  %2780 = vmatprep.mubr.msk.f32.mxu1 %vm3493_vm0, %v3494_v1  ;;  %s934_s24 = scalar_select %p933_p5, %s3471_s26, 1  ;;  %v2850_v10 = vpack.c.bf16 %v1062_v7, %v1061_v5  ;;  %v1063_v11 = vld [vmem:[#allocation10 + $0x10] sm:$0xff]  ;;  %v1064_v12 = vld [vmem:[#allocation10 + $0x18] sm:$0xff]  ;;  %v1151_v14 = vld [vmem:[#allocation13] sm:$0xff]  ;;  %vm980_vm1 = vcmask 261120   ;;  %vm1160_vm2 = vcmask 130048  }
 0x140   : > { %3029 = vset.pattern.permute.xlu0 %v3495_v2  ;;  %3030 = vset.pattern.permute.xlu1 %v3495_v2  ;;  %v1152_v15 = vld [vmem:[#allocation13 + $0x8] sm:$0xff]  ;;  %v2853_v16 = vpack.c.bf16 %v1064_v12, %v1063_v11  ;;  %v1396_v19 = vld [vmem:[#allocation16] sm:$0xff]  ;;  %s4833_s21 = scalar_lea.vmem [#allocation7], %s3953_s8  ;;  %vm1398_vm3 = vcmask 64512   ;;  %v1474_v32 = vld [vmem:[%s4722_s15 + $0x10] sm:$0xff]  ;;  %v4096_v42 = vshrl.u32 %v1295_v39, 7 }
 0x141   : > { %s2714_s7 = sshll.u32 %s934_s24, 6  ;;  %2851 = vmatpush3.bf16.msra.mxu1 %v2850_v10  ;;  %v2855_v17 = vpack.c.bf16 %v1152_v15, %v1151_v14  ;;  %s2675_s23 = sshll.u32 %s934_s24, 3  ;;  %v966_v18 = vld [vmem:[%s3959_s16] sm:$0xff]  ;;  %v1475_v34 = vld [vmem:[%s4722_s15 + $0x18] sm:$0xff]  ;;  %v3496_v37 = vmov 1966171168  }
 0x142   : > { %2852 = vmatprep.subr.bf16.mxu1 %v3492_v0  ;;  %s4832_s24 = sld [smem:[#allocation48_spill]]  ;;  %v4034_v24 = vld [vmem:[%s813_s6] ss:$0 sm:$0xff]  ;;  %v1473_v30 = vld [vmem:[%s4722_s15 + $0x8] sm:$0xff]  ;;  %v1293_v38 = vunpack.c.l.s4 %v3496_v37  ;;  %s4834_s4 = sld [smem:[#allocation52_spill]]  ;;  %v4108_v61 = vsub.s32 0, %v4096_v42 }
 0x143   : > { %s4829_s3 = smov %s4828_s1  ;;  %v969_v3 = vld [vmem:[%s4828_s1] sm:$0xff]  ;;  %1914 = vbcast.lane.b32.xlu1 %v4034_v24, 256  ;;  %v2679_v47 = vld [vmem:[#allocation12] ss:$0 sm:$0xff]  ;;  %s4843_s1 = sld [smem:[#allocation59_spill]]  ;;  %vm2090_vm5 = vcmask 1041409  }
 0x144   : > { %v970_v4 = vld [vmem:[%s4829_s3 + $0x8] sm:$0xff]  ;;  %v971_v8 = vld [vmem:[%s4829_s3 + $0x10] sm:$0xff]  ;;  %v972_v9 = vld [vmem:[%s4829_s3 + $0x18] sm:$0xff]  ;;  %s4011_s0 = scalar_lea.vmem %s4830_s29, %s2714_s7  ;;  %s949_s9 = scalar_lea.vmem %s4831_s20, %s2675_s23  ;;  %v1294_v41 = vunpack.c.0.s8 %v1293_v38  ;;  %vm2092_vm6 = vcmask 1042434   ;;  %vm2094_vm7 = vcmask 1043459   ;;  %vm2096_vm8 = vcmask 1044484  }
 0x145   : > { %v2844_v6 = vpack.c.bf16 %v970_v4, %v969_v3  ;;  %v2847_v13 = vpack.c.bf16 %v972_v9, %v971_v8  ;;  %2854 = vmatpush3.bf16.msra.mxu1 %v2853_v16  ;;  %v4022_v20 = vld [vmem:[%s4011_s0] sm:$0xff]  ;;  %v4030_v23 = vld [vmem:[%s4011_s0 + $0x8] sm:$0xff]  ;;  %v4041_v26 = vld [vmem:[%s4011_s0 + $0x10] sm:$0xff]  ;;  %s3497_s7 = smov 96   ;;  %s4242_s16 = sld [smem:[#allocation3]]  ;;  %vm2098_vm9 = vcmask 1045509  }
 0x146   : > { %2799 = vmatprep.subr.mxu1 %v3494_v1  ;;  %v4024_v21 = vld [vmem:[%s949_s9] sm:$0xff]  ;;  %v4056_v29 = vld [vmem:[%s4011_s0 + $0x18] sm:$0xff]  ;;  %v4075_v33 = vld [vmem:[%s4011_s0 + $0x28] sm:$0xff]  ;;  %v1297_v49 = vsub.s32 %v1294_v41, %v4096_v42  ;;  %s4835_s9 = sld [smem:[#allocation56_spill]]  ;;  %vm2100_vm10 = vcmask 1046534   ;;  %vm2102_vm11 = vcmask 1047559  }
 0x147   : > { %2845 = vmatpush3.bf16.msra.mxu0 %v2844_v6  ;;  %1147 = vperm.xlu0 %3029, %v4024_v21   ;;  %v961_v25 = vld [vmem:[%s4833_s21] sm:$0x1]  ;;  %v1054_v28 = vmul.f32 0.35355338, %v4024_v21  ;;  %v4082_v35 = vld [vmem:[%s4011_s0 + $0x30] sm:$0xff]  ;;  %v4090_v36 = vld [vmem:[%s4011_s0 + $0x38] sm:$0xff] }
 0x148   : > { %2846 = vmatprep.subr.bf16.mxu0 %v3492_v0  ;;  %s945_s30 = scalar_lea.vmem %s4832_s24, %s2675_s23  ;;  %2781 = vmatmul.mubr.msk.f32.vlgmr.msra.gmra.mrb[0].mxu1 %vm980_vm1, %v966_v18  ;;  %v1472_v27 = vld [vmem:[%s4722_s15] sm:$0xff]  ;;  %s3498_s20 = smov 16   ;;  %vm2293_vm12 = vcmask 122880   ;;  %vm2299_vm13 = vcmask 254080   ;;  %vm2305_vm14 = vcmask 385280   ;;  %vm2311_vm15 = vcmask 516480  }
 0x149   : > { %v962_v22 = vld [vmem:[%s945_s30] sm:$0xff]  ;;  %2800 = vmatpush3.msra.mxu1 %v1396_v19  ;;  %2801 = vmatprep.mubr.msk.f32.mxu1 %vm3493_vm0, %v3494_v1  ;;  %s4844_s29 = smov %s4843_s1  ;;  %s3499_s24 = smov 32  }
 0x14a   : > { %2804 = vmatprep.subr.mxu1 %v962_v22  ;;  %v4063_v31 = vld [vmem:[%s4011_s0 + $0x20] sm:$0xff]  ;;  %s3500_s21 = smov 48   ;;  %s4871_s6 = sld [smem:[#allocation58_spill]] }
 0x14b   : > { %2848 = vmatpush3.bf16.msra.mxu0 %v2847_v13  ;;  %1057 = vperm.xlu0 %3029, %v1054_v28   ;;  %v2677_v43 = vld [vmem:[%s4834_s4] ss:$0 sm:$0xff]  ;;  %v4102_v55 = vld [vmem:[#allocation15] ss:$0 sm:$0xff]  ;;  %p2049_p6 = scmp.gt.s32.totalorder %s4242_s16, 0  ;;  %s4550_s16 = scalar_lea.vmem [#allocation22], %s3953_s8 }
 0x14c   : > { %2856 = vmatprep.subr.bf16.mxu0 %v2855_v17  ;;  %2802 = vmatmul.mubr.msk.f32.vlgmr.msra.gmra.mrb[2].mxu1 %vm1398_vm3, %v961_v25  ;;  %v1477_v3 = vld [vmem:[%s4835_s9 + $0x8] sm:$0xff]  ;;  %v1476_v5 = vld [vmem:[%s4835_s9] sm:$0xff]  ;;  %s2672_s23 = sshll.u32 %s3953_s8, 6  ;;  %s2711_s4 = sshll.u32 %s3471_s26, 4 }
 0x14d   : > { %2805 = vmatpush3.msra.mxu1 %v962_v22  ;;  %2806 = vmatprep.mubr.msk.f32.mxu1 %vm1398_vm3, %v1472_v27  ;;  %v1479_v27 = vld [vmem:[%s4835_s9 + $0x18] sm:$0xff]  ;;  %s4339_s11 = scalar_select %p2049_p6, 1, 0 }
 0x14e   : > { %2770 = vmatmul.mubr.msk.f32.vlgmr.msra.gmra.mrb[0].mxu0 %vm980_vm1, %v966_v18  ;;  %s4561_s18 = scalar_lea.vmem [#allocation20], %s2672_s23  ;;  %s2369_s0 = sshll.u32 %s4550_s16, 4  ;;  %s4593_s0 = int_to_ptr.vmem [resolvable:$true] %s2369_s0 }
 0x14f   : > { %2858 = vmatpush3.bf16.msra.mxu0 %v2855_v17  ;;  %2787 = vmatprep.mubr.msk.f32.mxu0 %vm1160_vm2, %v4022_v20  ;;  %s2352_s17 = sshll.u32 %s4561_s18, 4  ;;  %s4873_s23 = sld [smem:[#allocation63_spill]]  ;;  %s4584_s17 = int_to_ptr.vmem [resolvable:$true] %s2352_s17 }
 0x150   : > { %2867 = vmatprep.subr.bf16.mxu0 %v3492_v0  ;;  %2807 = vmatmul.mubr.msk.f32.vlgmr.msra.gmra.mrb[4].mxu1 %vm1398_vm3, %v1473_v30  ;;  %p4875_p0 = scmp.ne.s32.totalorder %s4806_s19, 0 }
 0x151   : > { %2809 = vmatprep.mubr.msk.f32.mxu1 %vm1398_vm3, %v1474_v32 }
 0x152   : > { %2788 = vmatmul.mubr.msk.f32.vlgmr.msra.gmra.mrb[2].mxu0 %vm1160_vm2, %v4030_v23 }
 0x153   : > { %2790 = vmatprep.mubr.msk.f32.mxu0 %vm1160_vm2, %v4041_v26 }
 0x154   : > { %2810 = vmatmul.mubr.msk.f32.gmra.mrb[6].mxu1 %vm1398_vm3, %v1475_v34 }
 0x155   : > { %s4591_s3 = scalar_lea.hbm %s4873_s23, %s2711_s4 }
 0x156   : > { %2791 = vmatmul.mubr.msk.f32.gmra.mrb[4].mxu0 %vm1160_vm2, %v4056_v29 }
 0x157   : > { %2793 = vmatprep.mubr.msk.f32.mxu0 %vm1160_vm2, %v4063_v31 }
 0x15a   : > { %2794 = vmatmul.mubr.msk.f32.gmra.mrb[6].mxu0 %vm1160_vm2, %v4075_v33 }
 0x15b   : > { %2796 = vmatprep.mubr.msk.f32.mxu0 %vm1160_vm2, %v4082_v35 }
 0x15e   : > { %2797 = vmatmul.mubr.msk.f32.gmra.mrb[8].mxu0 %vm1160_vm2, %v4090_v36 }
 0x15f   : > { %2840 = vmatprep.mubr.msk.f32.mxu0 %vm3493_vm0, %v3494_v1 }
 0x1c6   : > { %v1148_v40 = vpop.permute.xlu0 %1147 }
 0x1ca   : > { %v1058_v45 = vpop.permute.xlu0 %1057 }
 0x21b   : > { %v1141_v48 = vpop.f32.mrb[0].mxu1 }
 0x21c   : > { %v2782_v51 = vpop.f32.mrb[1].mxu1  ;;  %v1142_v53 = vadd.f32 %v2679_v47, %v1141_v48 }
 0x21e   : > { %v4113_v4 = vmul.f32 %v1148_v40, %v1142_v53 }
 0x21f   : > { %v4104_v58 = vpop.f32.mrb[2].mxu1 }
 0x220   : > { %v2803_v62 = vpop.f32.mrb[3].mxu1 }
 0x221   : > { %v1050_v44 = vpop.f32.mrb[0].mxu0 }
 0x222   : > { %v1051_v46 = vadd.f32 %v2677_v43, %v1050_v44  ;;  %v2771_v50 = vpop.f32.mrb[1].mxu0 }
 0x223   : > { %v2808_v11 = vpop.f32.mrb[4].mxu1 }
 0x224   : > { %v1060_v52 = vmul.f32 %v1058_v45, %v1051_v46  ;;  %v1564_v13 = vadd.f32 %v2808_v11, %v1477_v3  ;;  %v1558_v16 = vpop.f32.mrb[5].mxu1 }
 0x225   : > { %v2789_v54 = vpop.f32.mrb[2].mxu0  ;;  %v1559_v19 = vadd.f32 %v1558_v16, %v1476_v5 }
 0x226   : > { %v1291_v56 = vcombine.high %v1060_v52, %v1060_v52  ;;  %v1298_v57 = vrot.slane %v1060_v52, %v1297_v49  ;;  %v1257_v59 = vadd.f32 %v2789_v54, %v4102_v55  ;;  %v1251_v60 = vpop.f32.mrb[3].mxu0  ;;  %v1578_v28 = vadd.f32 1.0, %v1564_v13  ;;  %v1478_v54 = vld [vmem:[%s4835_s9 + $0x10] sm:$0xff] }
 0x227   : > { %v1252_v14 = vadd.f32 %v4102_v55, %v1251_v60  ;;  %v1577_v39 = vadd.f32 1.0, %v1559_v19  ;;  %v2811_v43 = vpop.f32.mrb[6].mxu1  ;;  %v2109_v19 = vld [vmem:[%s4844_s29 + $0x18] sm:$0xff] }
 0x228   : > { %v1305_v63 = vrot.slane %v1291_v56, %v1297_v49  ;;  %v1306_v1 = vcombine.high %v1298_v57, %v1298_v57  ;;  %v1314_v2 = vrot.slane %v1298_v57, %v1297_v49  ;;  %v1574_v48 = vadd.f32 %v2811_v43, %v1479_v27  ;;  %1592 = vperm.xlu0 %3029, %v1578_v28   ;;  %v1568_v50 = vpop.f32.mrb[7].mxu1 }
 0x229   : > { %v2792_v6 = vpop.f32.mrb[4].mxu0  ;;  %1587 = vperm.xlu1 %3030, %v1577_v39   ;;  %v1569_v3 = vadd.f32 %v1568_v50, %v1478_v54 }
 0x22a   : > { %v1307_v7 = vcombine.high %v1305_v63, %v1305_v63  ;;  %v1321_v8 = vrot.slane %v1305_v63, %v1297_v49  ;;  %v1328_v9 = vrot.slane %v1306_v1, %v1297_v49  ;;  %v1336_v10 = vcombine.high %v1314_v2, %v1314_v2  ;;  %v1261_v12 = vpop.f32.mrb[5].mxu0 }
 0x22b   : > { %v1343_v15 = vrot.slane %v1314_v2, %v4108_v61  ;;  %v1267_v17 = vadd.f32 %v2792_v6, %v4102_v55  ;;  %v1262_v25 = vadd.f32 %v4102_v55, %v1261_v12  ;;  %v1580_v60 = vadd.f32 1.0, %v1574_v48 }
 0x22c   : > { %v1347_v18 = vrot.slane %v1328_v9, %v4108_v61  ;;  %v1338_v22 = vcombine.high %v1328_v9, %v1328_v9  ;;  %v1351_v32 = vrot.slane %v1336_v10, %v4108_v61  ;;  %v1335_v37 = vrot.slane %v1307_v7, %v1297_v49 }
 0x22d   : > { %v1380_v30 = vmul.f32 %v1343_v15, %v4113_v4  ;;  %v2795_v34 = vpop.f32.mrb[6].mxu0  ;;  %v1359_v53 = vrot.slane %v1321_v8, %v4108_v61  ;;  %1602 = vperm.xlu0 %3029, %v1580_v60   ;;  %v1579_v6 = vadd.f32 1.0, %v1569_v3  ;;  %v1337_v12 = vcombine.high %v1321_v8, %v1321_v8  ;;  %v2108_v8 = vld [vmem:[%s4844_s29 + $0x10] sm:$0xff] }
 0x22e   : > { %v1381_v38 = vmul.f32 %v1347_v18, %v4113_v4  ;;  %v1355_v40 = vrot.slane %v1338_v22, %v4108_v61  ;;  %v1277_v41 = vadd.f32 %v2795_v34, %v4102_v55  ;;  %v1271_v44 = vpop.f32.mrb[7].mxu0  ;;  %v1382_v46 = vmul.f32 %v1351_v32, %v4113_v4 }
 0x22f   : > { %v4131_v45 = vmul.f32 %v1380_v30, %v1252_v14  ;;  %v1363_v47 = vrot.slane %v1335_v37, %v4108_v61  ;;  %v1272_v52 = vadd.f32 %v4102_v55, %v1271_v44  ;;  %v1384_v63 = vmul.f32 %v1359_v53, %v4113_v4  ;;  %1597 = vperm.xlu1 %3030, %v1579_v6  }
 0x230   : > { %v4135_v51 = vmul.f32 %v1381_v38, %v1257_v59  ;;  %v1383_v49 = vmul.f32 %v1355_v40, %v4113_v4  ;;  %v4143_v56 = vmul.f32 %v1382_v46, %v1262_v25  ;;  %v1339_v9 = vcombine.high %v1335_v37, %v1335_v37 }
 0x231   : > { %v1385_v57 = vmul.f32 %v1363_v47, %v4113_v4  ;;  %2820 = vmatprep.mubr.msk.f32.mxu1 %vm980_vm1, %v4131_v45  ;;  %v2798_v59 = vpop.f32.mrb[8].mxu0  ;;  %v4153_v5 = vmul.f32 %v1384_v63, %v1272_v52  ;;  %1611 = vperm.xlu0 %3029, %v4024_v21   ;;  %v1367_v14 = vrot.slane %v1337_v12, %v4108_v61  ;;  %v2106_v21 = vld [vmem:[%s4843_s1] sm:$0xff]  ;;  %v1829_v22 = vsel %vm980_vm1, %v4131_v45, -inf  ;;  %s2715_s1 = sshll.u32 %s3471_s26, 10 }
 0x232   : > { %4836 = vst [vmem:[#allocation34_spill] sm:$0xff] %v4135_v51  ;;  %4837 = vst [vmem:[#allocation35_spill] sm:$0xff] %v4143_v56  ;;  %v4148_v62 = vmul.f32 %v1383_v49, %v1267_v17  ;;  %v1281_v1 = vpop.f32.mrb[9].mxu0  ;;  %v1287_v7 = vadd.f32 %v2798_v59, %v4102_v55  ;;  %v1371_v11 = vrot.slane %v1339_v9, %v4108_v61  ;;  %v1836_v25 = vsel %vm980_vm1, %v4135_v51, -inf }
 0x233   : > { %v4151_v2 = vmul.f32 %v1385_v57, %v1277_v41  ;;  %4840 = vst [vmem:[#allocation38_spill] sm:$0xff] %v4153_v5  ;;  %v1282_v10 = vadd.f32 %v4102_v55, %v1281_v1  ;;  %1981 = vrot.lane.b32.xlu1 %v4113_v4, %s3497_s7  ;;  %v1386_v16 = vmul.f32 %v1367_v14, %v4113_v4  ;;  %v2107_v55 = vld [vmem:[%s4844_s29 + $0x8] sm:$0xff]  ;;  %v1843_v27 = vsel %vm980_vm1, %v4143_v56, -inf  ;;  %s4848_s7 = sld [smem:[#allocation57_spill]] }
 0x234   : > { %4838 = vst [vmem:[#allocation36_spill] sm:$0xff] %v4148_v62  ;;  %v1387_v13 = vmul.f32 %v1371_v11, %v4113_v4  ;;  %v2868_v18 = vpack.c.bf16 %v2107_v55, %v2106_v21  ;;  %v2871_v4 = vpack.c.bf16 %v2109_v19, %v2108_v8  ;;  %v1830_v28 = vrot.slane %v1829_v22, 4 }
 0x235   : > { %4839 = vst [vmem:[#allocation37_spill] sm:$0xff] %v4151_v2  ;;  %v4165_v17 = vmul.f32 %v1386_v16, %v1282_v10  ;;  %v1837_v30 = vrot.slane %v1836_v25, 4  ;;  %v1850_v32 = vsel %vm980_vm1, %v4148_v62, -inf  ;;  %v1844_v34 = vrot.slane %v1843_v27, 4 }
 0x236   : > { %v4162_v15 = vmul.f32 %v1387_v13, %v1287_v7  ;;  %2869 = vmatpush3.bf16.msra.mxu0 %v2868_v18  ;;  %v1864_v37 = vsel %vm980_vm1, %v4151_v2, -inf  ;;  %v2193_v38 = vsel %vm1160_vm2, %v4030_v23, 0.0  ;;  %v1857_v39 = vsel %vm980_vm1, %v4153_v5, -inf }
 0x237   : > { %4842 = vst [vmem:[#allocation40_spill] sm:$0xff] %v4165_v17  ;;  %2870 = vmatprep.subr.bf16.mxu0 %v3492_v0  ;;  %v2192_v0 = vsel %vm1160_vm2, %v4022_v20, 0.0  ;;  %v1831_v40 = vmax.f32 %v1829_v22, %v1830_v28  ;;  %v1851_v41 = vrot.slane %v1850_v32, 4  ;;  %v1838_v44 = vmax.f32 %v1836_v25, %v1837_v30 }
 0x238   : > { %4841 = vst [vmem:[#allocation39_spill] sm:$0xff] %v4162_v15  ;;  %v1878_v43 = vsel %vm980_vm1, %v4162_v15, -inf  ;;  %v1865_v46 = vrot.slane %v1864_v37, 4  ;;  %v1871_v47 = vsel %vm980_vm1, %v4165_v17, -inf  ;;  %v2194_v48 = vadd.f32 %v2193_v38, %v2192_v0 }
 0x239   : > { %v1845_v50 = vmax.f32 %v1843_v27, %v1844_v34  ;;  %v1858_v49 = vrot.slane %v1857_v39, 4  ;;  %v2195_v52 = vsel %vm1160_vm2, %v4041_v26, 0.0  ;;  %v1879_v53 = vrot.slane %v1878_v43, 4 }
 0x23a   : > { %2872 = vmatpush3.bf16.msra.mxu0 %v2871_v4  ;;  %v1832_v54 = vrot.slane %v1831_v40, 2  ;;  %v1852_v57 = vmax.f32 %v1850_v32, %v1851_v41  ;;  %v1872_v60 = vrot.slane %v1871_v47, 4  ;;  %v1839_v59 = vrot.slane %v1838_v44, 2 }
 0x23b   : > { %v1866_v63 = vmax.f32 %v1864_v37, %v1865_v46  ;;  %v2196_v1 = vadd.f32 %v2195_v52, %v2194_v48  ;;  %v1846_v3 = vrot.slane %v1845_v50, 2  ;;  %v1859_v6 = vmax.f32 %v1857_v39, %v1858_v49 }
 0x23c   : > { %v2197_v7 = vsel %vm1160_vm2, %v4056_v29, 0.0  ;;  %v1880_v9 = vmax.f32 %v1878_v43, %v1879_v53  ;;  %v1833_v10 = vmax.f32 %v1831_v40, %v1832_v54  ;;  %v1853_v11 = vrot.slane %v1852_v57, 2 }
 0x23d   : > { %v1873_v12 = vmax.f32 %v1871_v47, %v1872_v60  ;;  %v1840_v13 = vmax.f32 %v1838_v44, %v1839_v59  ;;  %v1867_v14 = vrot.slane %v1866_v63, 2  ;;  %v2198_v16 = vadd.f32 %v2197_v7, %v2196_v1 }
 0x23e   : > { %v1847_v21 = vmax.f32 %v1845_v50, %v1846_v3  ;;  %v1860_v55 = vrot.slane %v1859_v6, 2  ;;  %v2199_v8 = vsel %vm1160_vm2, %v4063_v31, 0.0  ;;  %v1881_v18 = vrot.slane %v1880_v9, 2 }
 0x23f   : > { %v1834_v19 = vrot.slane %v1833_v10, 1  ;;  %v1854_v4 = vmax.f32 %v1852_v57, %v1853_v11  ;;  %v1874_v22 = vrot.slane %v1873_v12, 2  ;;  %v1841_v25 = vrot.slane %v1840_v13, 1 }
 0x240   : > { %v1868_v27 = vmax.f32 %v1866_v63, %v1867_v14  ;;  %v2200_v28 = vadd.f32 %v2199_v8, %v2198_v16  ;;  %v1848_v30 = vrot.slane %v1847_v21, 1  ;;  %v1861_v32 = vmax.f32 %v1859_v6, %v1860_v55 }
 0x241   : > { %v2201_v34 = vsel %vm1160_vm2, %v4075_v33, 0.0  ;;  %v1882_v37 = vmax.f32 %v1880_v9, %v1881_v18  ;;  %v1835_v0 = vmax.f32 %v1833_v10, %v1834_v19  ;;  %v1855_v38 = vrot.slane %v1854_v4, 1 }
 0x242   : > { %v1875_v39 = vmax.f32 %v1873_v12, %v1874_v22  ;;  %v1842_v40 = vmax.f32 %v1840_v13, %v1841_v25  ;;  %v1869_v41 = vrot.slane %v1868_v27, 1  ;;  %v2202_v43 = vadd.f32 %v2201_v34, %v2200_v28  ;;  %v1915_v28 = vpop.permute.xlu1 %1914 }
 0x243   : > { %v1849_v44 = vmax.f32 %v1847_v21, %v1848_v30  ;;  %v1862_v46 = vrot.slane %v1861_v32, 1  ;;  %v2203_v47 = vsel %vm1160_vm2, %v4082_v35, 0.0  ;;  %v1883_v48 = vrot.slane %v1882_v37, 1 }
 0x244   : > { %v1885_v50 = vsub.f32 %v4131_v45, %v1835_v0  ;;  %v1856_v49 = vmax.f32 %v1854_v4, %v1855_v38  ;;  %v1876_v52 = vrot.slane %v1875_v39, 1  ;;  %v1886_v53 = vsub.f32 %v4135_v51, %v1842_v40 }
 0x245   : > { %v1870_v54 = vmax.f32 %v1868_v27, %v1869_v41  ;;  %v2204_v57 = vadd.f32 %v2203_v47, %v2202_v43  ;;  %v1887_v60 = vsub.f32 %v4143_v56, %v1849_v44  ;;  %v1863_v59 = vmax.f32 %v1861_v32, %v1862_v46 }
 0x246   : > { %v2205_v63 = vsel %vm1160_vm2, %v4090_v36, 0.0  ;;  %v1884_v1 = vmax.f32 %v1882_v37, %v1883_v48  ;;  %v1893_v3 = vmul.f32 1.442695, %v1885_v50  ;;  %v1888_v6 = vsub.f32 %v4148_v62, %v1856_v49 }
 0x247   : > { %v1877_v7 = vmax.f32 %v1875_v39, %v1876_v52  ;;  %v1895_v9 = vmul.f32 1.442695, %v1886_v53  ;;  %v1890_v45 = vsub.f32 %v4151_v2, %v1870_v54  ;;  %v2206_v10 = vadd.f32 %v2205_v63, %v2204_v57 }
 0x248   : > { %v1897_v11 = vmul.f32 1.442695, %v1887_v60  ;;  %v1889_v12 = vsub.f32 %v4153_v5, %v1863_v59  ;;  %v1892_v13 = vsub.f32 %v4162_v15, %v1884_v1  ;;  %3031 = vpow2.f32 %v1893_v3 }
 0x249   : > { %v1899_v14 = vmul.f32 1.442695, %v1888_v6  ;;  %v1891_v16 = vsub.f32 %v4165_v17, %v1877_v7  ;;  %3033 = vpow2.f32 %v1895_v9  ;;  %v1903_v21 = vmul.f32 1.442695, %v1890_v45 }
 0x24a   : > { %v2207_v55 = vrot.slane %v2206_v10, 4  ;;  %3035 = vpow2.f32 %v1897_v11  ;;  %v1901_v8 = vmul.f32 1.442695, %v1889_v12  ;;  %v1907_v18 = vmul.f32 1.442695, %v1892_v13 }
 0x24b   : > { %3037 = vpow2.f32 %v1899_v14  ;;  %v1905_v19 = vmul.f32 1.442695, %v1891_v16  ;;  %v4230_v46 = vsel %vm1160_vm2, %v4022_v20, inf  ;;  %v4246_v54 = vsel %vm1160_vm2, %v4022_v20, -inf }
 0x24c   : > { %3039 = vpow2.f32 %v1903_v21  ;;  %v2208_v4 = vadd.f32 %v2207_v55, %v2206_v10  ;;  %v4250_v57 = vsel %vm1160_vm2, %v4030_v23, inf  ;;  %v4254_v60 = vsel %vm1160_vm2, %v4030_v23, -inf }
 0x24d   : > { %3041 = vpow2.f32 %v1901_v8  ;;  %v4258_v59 = vsel %vm1160_vm2, %v4063_v31, inf  ;;  %v4268_v7 = vsel %vm1160_vm2, %v4041_v26, inf  ;;  %v4272_v9 = vsel %vm1160_vm2, %v4041_v26, -inf }
 0x24e   : > { %3043 = vpow2.f32 %v1907_v18  ;;  %v2209_v25 = vrot.slane %v2208_v4, 2  ;;  %v4276_v11 = vsel %vm1160_vm2, %v4056_v29, inf  ;;  %v4286_v16 = vsel %vm1160_vm2, %v4056_v29, -inf }
 0x24f   : > { %3045 = vpow2.f32 %v1905_v19  ;;  %v4292_v55 = vsel %vm1160_vm2, %v4063_v31, -inf  ;;  %v4296_v18 = vsel %vm1160_vm2, %v4075_v33, inf }
 0x250   : > { %v2210_v34 = vadd.f32 %v2209_v25, %v2208_v4 }
 0x252   : > { %v3032_v22 = vpop.eup %3031  ;;  %v2211_v47 = vrot.slane %v2210_v34, 1 }
 0x253   : > { %v3034_v27 = vpop.eup %3033  ;;  %v4220_v37 = vmul.f32 %v3032_v22, %v1915_v28 }
 0x254   : > { %v3036_v30 = vpop.eup %3035  ;;  %v4222_v38 = vmul.f32 %v3034_v27, %v1915_v28  ;;  %v4278_v12 = vadd.f32 %v2211_v47, %v2210_v34  ;;  %v4306_v34 = vsel %vm1160_vm2, %v4075_v33, -inf }
 0x255   : > { %v3038_v32 = vpop.eup %3037  ;;  %v4224_v39 = vmul.f32 %v3036_v30, %v1915_v28  ;;  %v1924_v48 = vsel %vm980_vm1, %v4220_v37, 0.0 }
 0x256   : > { %v3040_v0 = vpop.eup %3039  ;;  %v4226_v43 = vmul.f32 %v3038_v32, %v1915_v28  ;;  %v1931_v52 = vsel %vm980_vm1, %v4222_v38, 0.0  ;;  %v1925_v3 = vrot.slane %v1924_v48, 4  ;;  %4846 = vst [vmem:[#allocation42_spill] sm:$0xff] %v4278_v12 }
 0x257   : > { %v3042_v40 = vpop.eup %3041  ;;  %v4236_v49 = vmul.f32 %v3040_v0, %v1915_v28  ;;  %v1938_v53 = vsel %vm980_vm1, %v4224_v39, 0.0  ;;  %v1932_v45 = vrot.slane %v1931_v52, 4  ;;  %v4310_v0 = vsel %vm1160_vm2, %v4082_v35, inf }
 0x258   : > { %v3044_v41 = vpop.eup %3043  ;;  %v4234_v50 = vmul.f32 %v3042_v40, %v1915_v28  ;;  %v1945_v6 = vsel %vm980_vm1, %v4226_v43, 0.0  ;;  %v1939_v10 = vrot.slane %v1938_v53, 4  ;;  %v1926_v19 = vadd.f32 %v1925_v3, %v1924_v48 }
 0x259   : > { %v3046_v44 = vpop.eup %3045  ;;  %v4262_v1 = vmul.f32 %v3044_v41, %v1915_v28  ;;  %v1959_v14 = vsel %vm980_vm1, %v4236_v49, 0.0  ;;  %v1946_v8 = vrot.slane %v1945_v6, 4  ;;  %v1933_v25 = vadd.f32 %v1932_v45, %v1931_v52 }
 0x25a   : > { %v4260_v63 = vmul.f32 %v3046_v44, %v1915_v28  ;;  %v1952_v13 = vsel %vm980_vm1, %v4234_v50, 0.0  ;;  %v1940_v27 = vadd.f32 %v1939_v10, %v1938_v53  ;;  %v1960_v30 = vrot.slane %v1959_v14, 4  ;;  %v1397_v44 = vld [vmem:[#allocation18] sm:$0x1] }
 0x25b   : > { %4845 = vst [vmem:[#allocation41_spill] sm:$0xff] %v4262_v1  ;;  %v1973_v22 = vsel %vm980_vm1, %v4262_v1, 0.0  ;;  %v1953_v28 = vrot.slane %v1952_v13, 4  ;;  %v4313_v40 = vmul.f32 0.015625, %v4278_v12  ;;  %v4318_v41 = vsel %vm1160_vm2, %v4082_v35, -inf }
 0x25c   : > { %v1966_v4 = vsel %vm980_vm1, %v4260_v63, 0.0  ;;  %v1947_v47 = vadd.f32 %v1946_v8, %v1945_v6  ;;  %v1974_v52 = vrot.slane %v1973_v22, 4  ;;  %v4324_v3 = vsel %vm1160_vm2, %v4090_v36, inf }
 0x25d   : > { %v1967_v48 = vrot.slane %v1966_v4, 4  ;;  %v2221_v53 = vsub.f32 %v4090_v36, %v4313_v40  ;;  %v4328_v45 = vsel %vm1160_vm2, %v4090_v36, -inf  ;;  %v1927_v10 = vrot.slane %v1926_v19, 2 }
 0x25e   : > { %v1934_v32 = vrot.slane %v1933_v25, 2  ;;  %v1941_v21 = vrot.slane %v1940_v27, 2  ;;  %v1954_v12 = vadd.f32 %v1953_v28, %v1952_v13  ;;  %v1961_v15 = vadd.f32 %v1960_v30, %v1959_v14 }
 0x25f   : > { %v1469_v2 = vadd.f32 %v4104_v58, %v1397_v44  ;;  %v1948_v13 = vrot.slane %v1947_v47, 2  ;;  %v1968_v14 = vadd.f32 %v1967_v48, %v1966_v4  ;;  %v1975_v28 = vadd.f32 %v1974_v52, %v1973_v22 }
 0x260   : > { %v4343_v30 = vmul.f32 %v2221_v53, %v2221_v53  ;;  %v1928_v6 = vadd.f32 %v1927_v10, %v1926_v19  ;;  %v1935_v58 = vadd.f32 %v1934_v32, %v1933_v25  ;;  %v1942_v44 = vadd.f32 %v1941_v21, %v1940_v27 }
 0x261   : > { %v1955_v5 = vrot.slane %v1954_v12, 2  ;;  %v1962_v62 = vrot.slane %v1961_v15, 2  ;;  %v4349_v56 = vadd.f32 1.0, %v1469_v2  ;;  %v2214_v4 = vsub.f32 %v4022_v20, %v4313_v40 }
 0x262   : > { %v2215_v22 = vsub.f32 %v4030_v23, %v4313_v40  ;;  %v1949_v48 = vadd.f32 %v1948_v13, %v1947_v47  ;;  %v1969_v52 = vrot.slane %v1968_v14, 2  ;;  %v1976_v53 = vrot.slane %v1975_v28, 2 }
 0x263   : > { %4847 = vst [vmem:[#allocation43_spill] sm:$0xff] %v4349_v56  ;;  %v1929_v17 = vrot.slane %v1928_v6, 1  ;;  %v2216_v21 = vsub.f32 %v4041_v26, %v4313_v40  ;;  %v2222_v19 = vmul.f32 %v2214_v4, %v2214_v4  ;;  %v1936_v2 = vrot.slane %v1935_v58, 1 }
 0x264   : > { %v2223_v25 = vmul.f32 %v2215_v22, %v2215_v22  ;;  %v1943_v27 = vrot.slane %v1942_v44, 1  ;;  %v1956_v32 = vadd.f32 %v1955_v5, %v1954_v12  ;;  %v1963_v10 = vadd.f32 %v1962_v62, %v1961_v15 }
 0x265   : > { %v2217_v20 = vsub.f32 %v4056_v29, %v4313_v40  ;;  %v2224_v51 = vmul.f32 %v2216_v21, %v2216_v21  ;;  %v2230_v23 = vsel %vm1160_vm2, %v2222_v19, 0.0  ;;  %v1950_v13 = vrot.slane %v1949_v48, 1  ;;  %v1582_v29 = vld [vmem:[%s4848_s7 + $0x8] sm:$0xff] }
 0x266   : > { %v2231_v47 = vsel %vm1160_vm2, %v2223_v25, 0.0  ;;  %v1970_v36 = vadd.f32 %v1969_v52, %v1968_v14  ;;  %v1977_v8 = vadd.f32 %v1976_v53, %v1975_v28  ;;  %v1930_v1 = vadd.f32 %v1929_v17, %v1928_v6  ;;  %v1581_v14 = vld [vmem:[%s4848_s7] sm:$0xff] }
 0x267   : > { %v2232_v56 = vadd.f32 %v2231_v47, %v2230_v23  ;;  %v2218_v26 = vsub.f32 %v4063_v31, %v4313_v40  ;;  %v2225_v4 = vmul.f32 %v2217_v20, %v2217_v20  ;;  %v2233_v5 = vsel %vm1160_vm2, %v2224_v51, 0.0 }
 0x268   : > { %v1937_v62 = vadd.f32 %v1936_v2, %v1935_v58  ;;  %v1944_v15 = vadd.f32 %v1943_v27, %v1942_v44  ;;  %v1957_v12 = vrot.slane %v1956_v32, 1  ;;  %v1964_v21 = vrot.slane %v1963_v10, 1 }
 0x269   : > { %v2234_v22 = vadd.f32 %v2233_v5, %v2232_v56  ;;  %v2219_v17 = vsub.f32 %v4075_v33, %v4313_v40  ;;  %v2226_v31 = vmul.f32 %v2218_v26, %v2218_v26  ;;  %v2235_v6 = vsel %vm1160_vm2, %v2225_v4, 0.0  ;;  %v1584_v4 = vld [vmem:[%s4848_s7 + $0x18] sm:$0xff] }
 0x26a   : > { %v1951_v51 = vadd.f32 %v1950_v13, %v1949_v48  ;;  %v1971_v28 = vrot.slane %v1970_v36, 1  ;;  %v1978_v58 = vrot.slane %v1977_v8, 1  ;;  %v2220_v56 = vsub.f32 %v4082_v35, %v4313_v40 }
 0x26b   : > { %v2236_v52 = vadd.f32 %v2235_v6, %v2234_v22  ;;  %v2227_v25 = vmul.f32 %v2219_v17, %v2219_v17  ;;  %v2237_v2 = vsel %vm1160_vm2, %v2226_v31, 0.0  ;;  %v1958_v27 = vadd.f32 %v1957_v12, %v1956_v32 }
 0x26c   : > { %3047 = vrcp.f32 %v1930_v1  ;;  %v1965_v23 = vadd.f32 %v1964_v21, %v1963_v10  ;;  %v2228_v47 = vmul.f32 %v2220_v56, %v2220_v56  ;;  %v1979_v13 = vadd.f32 %v1978_v58, %v1977_v8  ;;  %v1583_v10 = vld [vmem:[%s4848_s7 + $0x10] sm:$0xff] }
 0x26d   : > { %v2238_v33 = vadd.f32 %v2237_v2, %v2236_v52  ;;  %3049 = vrcp.f32 %v1937_v62  ;;  %v2239_v48 = vsel %vm1160_vm2, %v2227_v25, 0.0  ;;  %v1972_v5 = vadd.f32 %v1971_v28, %v1970_v36 }
 0x26e   : > { %3051 = vrcp.f32 %v1944_v15  ;;  %v1644_v1 = vsub.s32 3, %v4096_v42  ;;  %v2241_v32 = vsel %vm1160_vm2, %v2228_v47, 0.0  ;;  %v1637_v8 = vsub.s32 2, %v4096_v42 }
 0x26f   : > { %v2240_v40 = vadd.f32 %v2239_v48, %v2238_v33  ;;  %3053 = vrcp.f32 %v1951_v51  ;;  %v1658_v62 = vsub.s32 5, %v4096_v42  ;;  %v1651_v36 = vsub.s32 4, %v4096_v42 }
 0x270   : > { %3055 = vrcp.f32 %v1958_v27  ;;  %v1665_v17 = vsub.s32 6, %v4096_v42  ;;  %v4849_v28 = vmin.f32 %v4250_v57, %v4296_v18  ;;  %v4851_v52 = vmin.f32 %v4276_v11, %v4324_v3 }
 0x271   : > { %v2242_v15 = vadd.f32 %v2241_v32, %v2240_v40  ;;  %3057 = vrcp.f32 %v1965_v23  ;;  %v4854_v57 = vmax.f32 %v4246_v54, %v4292_v55 }
 0x272   : > { %3059 = vrcp.f32 %v1979_v13  ;;  %v4858_v13 = vld [vmem:[#allocation41_spill] sm:$0xff] }
 0x273   : > { %3061 = vrcp.f32 %v1972_v5 }
 0x276   : > { %v4441_v55 = vpop.eup %3047 }
 0x277   : > { %v4453_v56 = vpop.eup %3049 }
 0x278   : > { %v4459_v33 = vpop.eup %3051 }
 0x2a7   : > { %v1593_v44 = vpop.permute.xlu0 %1592 }
 0x2a8   : > { %v1606_v53 = vmul.f32 %v1593_v44, %v1582_v29  ;;  %v1588_v19 = vpop.permute.xlu1 %1587  ;;  %v2243_v29 = vsel %vm1160_vm2, %v4343_v30, 0.0  ;;  %v4850_v30 = vmin.f32 %v4230_v46, %v4258_v59  ;;  %v4855_v46 = vmax.f32 %v4286_v16, %v4328_v45 }
 0x2a9   : > { %v1605_v20 = vmul.f32 %v1588_v19, %v1581_v14  ;;  %v1672_v14 = vsub.s32 7, %v4096_v42  ;;  %v4396_v31 = vadd.f32 %v2243_v29, %v2242_v15  ;;  %v4856_v59 = vmax.f32 %v4272_v9, %v4318_v41 }
 0x2aa   : > { %v4408_v58 = vmin.f32 %v4850_v30, %v4849_v28  ;;  %v4861_v28 = vstv %s4339_s11 }
 0x2ab   : > { %v2859_v26 = vpack.c.bf16 %v1606_v53, %v1605_v20  ;;  %v2245_v44 = vrot.slane %v4396_v31, 4  ;;  %v4852_v53 = vmin.f32 %v4268_v7, %v4310_v0  ;;  %v4433_v11 = vmax.f32 %v4856_v59, %v4855_v46 }
 0x2ac   : > { %v1603_v35 = vpop.permute.xlu0 %1602  ;;  %v4857_v7 = vsub.s32 1, %v4096_v42  ;;  %vm4489_vm4 = vcmp.eq.s32.totalorder %v4861_v28, 1 }
 0x2ad   : > { %2860 = vmatprep.subr.bf16.mxu1 %v2859_v26  ;;  %v1608_v12 = vmul.f32 %v1603_v35, %v1584_v4  ;;  %v4417_v19 = vmin.f32 %v4852_v53, %v4851_v52  ;;  %v4465_v4 = vpop.eup %3053 }
 0x2ae   : > { %2862 = vmatpush3.bf16.msra.mxu1 %v2859_v26  ;;  %v1598_v22 = vpop.permute.xlu1 %1597 }
 0x2af   : > { %v1607_v6 = vmul.f32 %v1598_v22, %v1583_v10 }
 0x2b0   : > { %v4392_v21 = vpop.permute.xlu0 %1611 }
 0x2b1   : > { %v4400_v51 = vmul.f32 %v4034_v24, %v4392_v21  ;;  %v4853_v24 = vmax.f32 %v4254_v60, %v4306_v34  ;;  %v2863_v3 = vpack.c.bf16 %v1608_v12, %v1607_v6 }
 0x2b2   : > { %v1982_v34 = vpop.permute.xlu1 %1981 }
 0x2b3   : > { %v4425_v18 = vmax.f32 %v4854_v57, %v4853_v24  ;;  %v1631_v0 = vrot.slane %v4400_v51, %v4857_v7  ;;  %v1624_v60 = vrot.slane %v4400_v51, %v4108_v61  ;;  %v1645_v54 = vrot.slane %v4400_v51, %v1644_v1  ;;  %2864 = vmatprep.subr.bf16.mxu1 %v2863_v3 }
 0x2b4   : > { %v1638_v16 = vrot.slane %v4400_v51, %v1637_v8  ;;  %v4445_v45 = vrot.slane %v4400_v51, %v1658_v62  ;;  %v4448_v9 = vrot.slane %v4400_v51, %v1651_v36  ;;  %v4451_v41 = vrot.slane %v4400_v51, %v1672_v14  ;;  %2866 = vmatpush3.bf16.msra.mxu1 %v2863_v3  ;;  %v4859_v62 = vld [vmem:[#allocation34_spill] sm:$0xff]  ;;  %v4860_v14 = vld [vmem:[#allocation35_spill] sm:$0xff] }
 0x2b5   : > { %v1984_v25 = vmul.f32 %v1982_v34, %v4220_v37  ;;  %v1985_v2 = vmul.f32 %v1982_v34, %v4222_v38  ;;  %v1986_v27 = vmul.f32 %v1982_v34, %v4224_v39  ;;  %v1987_v20 = vmul.f32 %v1982_v34, %v4226_v43  ;;  %1633 = vbcast.lane.b32.xlu0 %v1631_v0, 256 }
 0x2b6   : > { %v1988_v23 = vmul.f32 %v1982_v34, %v4234_v50  ;;  %v1989_v47 = vmul.f32 %v1982_v34, %v4236_v49  ;;  %v1990_v48 = vmul.f32 %v1982_v34, %v4260_v63  ;;  %v1991_v26 = vmul.f32 %v1982_v34, %v4858_v13  ;;  %1626 = vbcast.lane.b32.xlu1 %v1624_v60, 256  ;;  %v4471_v50 = vpop.eup %3055 }
 0x2b7   : > { %v1992_v37 = vsel %vm980_vm1, %v1984_v25, 0.0  ;;  %v1999_v38 = vsel %vm980_vm1, %v1985_v2, 0.0  ;;  %v2006_v39 = vsel %vm980_vm1, %v1986_v27, 0.0  ;;  %v2013_v43 = vsel %vm980_vm1, %v1987_v20, 0.0  ;;  %v4473_v5 = vpop.eup %3057  ;;  %2821 = vmatmul.mubr.msk.f32.vlgmr.msra.gmra.mrb[8].mxu1 %vm980_vm1, %v4859_v62  ;;  %v4864_v2 = vld [vmem:[#allocation36_spill] sm:$0xff] }
 0x2b8   : > { %v1993_v49 = vrot.slane %v1992_v37, 4  ;;  %v2000_v35 = vrot.slane %v1999_v38, 4  ;;  %v2007_v63 = vrot.slane %v2006_v39, 4  ;;  %v2014_v40 = vrot.slane %v2013_v43, 4  ;;  %v4481_v15 = vpop.eup %3059  ;;  %2823 = vmatprep.mubr.msk.f32.mxu1 %vm980_vm1, %v4860_v14 }
 0x2b9   : > { %v2020_v1 = vsel %vm980_vm1, %v1988_v23, 0.0  ;;  %v2027_v32 = vsel %vm980_vm1, %v1989_v47, 0.0  ;;  %v2034_v10 = vsel %vm980_vm1, %v1990_v48, 0.0  ;;  %v2041_v8 = vsel %vm980_vm1, %v1991_v26, 0.0  ;;  %v4485_v6 = vpop.eup %3061  ;;  %1647 = vbcast.lane.b32.xlu0 %v1645_v54, 256  ;;  %v4865_v48 = vld [vmem:[#allocation38_spill] sm:$0xff] }
 0x2ba   : > { %v1994_v12 = vadd.f32 %v1993_v49, %v1992_v37  ;;  %v2001_v36 = vadd.f32 %v2000_v35, %v1999_v38  ;;  %v2008_v29 = vadd.f32 %v2007_v63, %v2006_v39  ;;  %v2015_v22 = vadd.f32 %v2014_v40, %v2013_v43  ;;  %1640 = vbcast.lane.b32.xlu1 %v1638_v16, 256 }
 0x2bb   : > { %v2021_v52 = vrot.slane %v2020_v1, 4  ;;  %v2028_v53 = vrot.slane %v2027_v32, 4  ;;  %v2035_v24 = vrot.slane %v2034_v10, 4  ;;  %v2042_v57 = vrot.slane %v2041_v8, 4  ;;  %2824 = vmatmul.mubr.msk.f32.gmra.mrb[10].mxu1 %vm980_vm1, %v4864_v2 }
 0x2bc   : > { %v1995_v46 = vrot.slane %v1994_v12, 2  ;;  %v2002_v59 = vrot.slane %v2001_v36, 2  ;;  %v2009_v3 = vrot.slane %v2008_v29, 2  ;;  %v2016_v7 = vrot.slane %v2015_v22, 2  ;;  %2826 = vmatprep.mubr.msk.f32.mxu1 %vm980_vm1, %v4865_v48 }
 0x2bd   : > { %v2022_v0 = vadd.f32 %v2021_v52, %v2020_v1  ;;  %v2029_v60 = vadd.f32 %v2028_v53, %v2027_v32  ;;  %v2036_v34 = vadd.f32 %v2035_v24, %v2034_v10  ;;  %v2043_v25 = vadd.f32 %v2042_v57, %v2041_v8  ;;  %1661 = vbcast.lane.b32.xlu0 %v4445_v45, 256  ;;  %v4866_v1 = vld [vmem:[#allocation37_spill] sm:$0xff]  ;;  %v4867_v45 = vld [vmem:[#allocation40_spill] sm:$0xff] }
 0x2be   : > { %v1996_v27 = vadd.f32 %v1995_v46, %v1994_v12  ;;  %v2003_v20 = vadd.f32 %v2002_v59, %v2001_v36  ;;  %v2010_v23 = vadd.f32 %v2009_v3, %v2008_v29  ;;  %v2017_v47 = vadd.f32 %v2016_v7, %v2015_v22  ;;  %1654 = vbcast.lane.b32.xlu1 %v4448_v9, 256  ;;  %v4868_v46 = vld [vmem:[#allocation39_spill] sm:$0xff] }
 0x2bf   : > { %v2023_v54 = vrot.slane %v2022_v0, 2  ;;  %v2030_v16 = vrot.slane %v2029_v60, 2  ;;  %v2037_v13 = vrot.slane %v2036_v34, 2  ;;  %v2044_v26 = vrot.slane %v2043_v25, 2  ;;  %2827 = vmatmul.mubr.msk.f32.gmra.mrb[12].mxu1 %vm980_vm1, %v4866_v1 }
 0x2c0   : > { %v1997_v37 = vrot.slane %v1996_v27, 1  ;;  %v2004_v38 = vrot.slane %v2003_v20, 1  ;;  %v2011_v39 = vrot.slane %v2010_v23, 1  ;;  %v2018_v43 = vrot.slane %v2017_v47, 1  ;;  %2829 = vmatprep.mubr.msk.f32.mxu1 %vm980_vm1, %v4867_v45 }
 0x2c1   : > { %v2024_v49 = vadd.f32 %v2023_v54, %v2022_v0  ;;  %v2031_v35 = vadd.f32 %v2030_v16, %v2029_v60  ;;  %v2038_v63 = vadd.f32 %v2037_v13, %v2036_v34  ;;  %v2045_v40 = vadd.f32 %v2044_v26, %v2043_v25  ;;  %1675 = vbcast.lane.b32.xlu0 %v4451_v41, 256 }
 0x2c2   : > { %v1998_v32 = vadd.f32 %v1997_v37, %v1996_v27  ;;  %v2005_v10 = vadd.f32 %v2004_v38, %v2003_v20  ;;  %v2012_v8 = vadd.f32 %v2011_v39, %v2010_v23  ;;  %v2019_v62 = vadd.f32 %v2018_v43, %v2017_v47 }
 0x2c3   : > { %v2025_v9 = vrot.slane %v2024_v49, 1  ;;  %v2032_v12 = vrot.slane %v2031_v35, 1  ;;  %v2039_v36 = vrot.slane %v2038_v63, 1  ;;  %v1666_v29 = vrot.slane %v4400_v51, %v1665_v17  ;;  %2830 = vmatmul.mubr.msk.f32.gmra.mrb[14].mxu1 %vm980_vm1, %v4868_v46 }
 0x2c4   : > { %v2051_v22 = vmul.f32 %v4441_v55, %v1998_v32  ;;  %v2053_v14 = vmul.f32 %v4453_v56, %v2005_v10  ;;  %v2055_v28 = vmul.f32 %v4459_v33, %v2012_v8  ;;  %v2057_v52 = vmul.f32 %v4465_v4, %v2019_v62 }
 0x2c5   : > { %v2026_v53 = vadd.f32 %v2025_v9, %v2024_v49  ;;  %v2033_v24 = vadd.f32 %v2032_v12, %v2031_v35  ;;  %v2040_v57 = vadd.f32 %v2039_v36, %v2038_v63  ;;  %1668 = vbcast.lane.b32.xlu1 %v1666_v29, 256  ;;  %v2046_v41 = vrot.slane %v2045_v40, 1  ;;  %v4870_v63 = vld [vmem:[#allocation42_spill] sm:$0xff] }
 0x2c6   : > { %v2069_v42 = vsel %vm4489_vm4, %v2051_v22, 0.0  ;;  %v2070_v17 = vsel %vm4489_vm4, %v2053_v14, 0.0  ;;  %v2071_v55 = vsel %vm4489_vm4, %v2055_v28, 0.0  ;;  %v2246_v59 = vadd.f32 %v2245_v44, %v4396_v31  ;;  %2294 = vst.msk [vmem:[%s4550_s16] sm:$0x1] %vm2293_vm12, %v4870_v63 }
 0x2c7   : > { %v2059_v51 = vmul.f32 %v4471_v50, %v2026_v53  ;;  %v2047_v56 = vadd.f32 %v2046_v41, %v2045_v40  ;;  %v2061_v33 = vmul.f32 %v4473_v5, %v2033_v24  ;;  %v2091_v4 = vsel %vm2090_vm5, %v2070_v17, %v2069_v42  ;;  %v2695_v22 = vld [vmem:[%s4871_s6] ss:$0 sm:$0xff] }
 0x2c8   : > { %v2265_v3 = vmin.f32 %v4408_v58, %v4417_v19  ;;  %v2286_v7 = vmax.f32 %v4425_v18, %v4433_v11  ;;  %v2063_v50 = vmul.f32 %v4485_v6, %v2040_v57  ;;  %v2072_v60 = vsel %vm4489_vm4, %v2057_v52, 0.0  ;;  %v4869_v6 = vld [vmem:[#allocation43_spill] sm:$0xff] }
 0x2c9   : > { %v2065_v0 = vmul.f32 %v4481_v15, %v2047_v56  ;;  %v2093_v5 = vsel %vm2092_vm6, %v2071_v55, %v2091_v4  ;;  %v2247_v34 = vrot.slane %v2246_v59, 2  ;;  %v2073_v31 = vsel %vm4489_vm4, %v2059_v51, 0.0 }
 0x2ca   : > { %v2266_v25 = vrot.slane %v2265_v3, 4  ;;  %v2287_v2 = vrot.slane %v2286_v7, 4  ;;  %v2074_v58 = vsel %vm4489_vm4, %v2061_v33, 0.0  ;;  %v2095_v44 = vsel %vm2094_vm7, %v2072_v60, %v2093_v5 }
 0x2cb   : > { %v2097_v19 = vsel %vm2096_vm8, %v2073_v31, %v2095_v44  ;;  %v2248_v18 = vadd.f32 %v2247_v34, %v2246_v59  ;;  %v2081_v27 = vrot.slane %v4869_v6, %v4108_v61  ;;  %v2075_v20 = vsel %vm4489_vm4, %v2063_v50, 0.0 }
 0x2cc   : > { %v2267_v11 = vmin.f32 %v2265_v3, %v2266_v25  ;;  %v2288_v15 = vmax.f32 %v2286_v7, %v2287_v2  ;;  %v2076_v23 = vsel %vm4489_vm4, %v2065_v0, 0.0  ;;  %v2099_v47 = vsel %vm2098_vm9, %v2074_v58, %v2097_v19 }
 0x2cd   : > { %v2101_v48 = vsel %vm2100_vm10, %v2075_v20, %v2099_v47  ;;  %v2249_v54 = vrot.slane %v2248_v18, 1 }
 0x2ce   : > { %v2268_v16 = vrot.slane %v2267_v11, 2  ;;  %v2289_v13 = vrot.slane %v2288_v15, 2  ;;  %v2103_v26 = vsel %vm2102_vm11, %v2076_v23, %v2101_v48 }
 0x2cf   : > { %v2105_v37 = vmul.f32 %v2103_v26, %v2081_v27  ;;  %v2250_v38 = vadd.f32 %v2249_v54, %v2248_v18 }
 0x2d0   : > { %v2269_v39 = vmin.f32 %v2267_v11, %v2268_v16  ;;  %v2290_v43 = vmax.f32 %v2288_v15, %v2289_v13 }
 0x2d1   : > { %2841 = vmatmul.mubr.msk.f32.vlgmr.msra.gmra.mrb[10].mxu0 %vm980_vm1, %v2105_v37  ;;  %2296 = vrot.lane.b32.xlu1 %v2250_v38, %s3498_s20  ;;  %s3321_s20 = scalar_lea.vmem %s4584_s17, 1024 }
 0x2d2   : > { %v2270_v61 = vrot.slane %v2269_v39, 1  ;;  %v2291_v30 = vrot.slane %v2290_v43, 1  ;;  %p3322_p1 = scmp.ne.s32.totalorder %s4584_s17, %s3321_s20 }
 0x2d4   : > { %v2271_v49 = vmin.f32 %v2269_v39, %v2270_v61  ;;  %v2292_v35 = vmax.f32 %v2290_v43, %v2291_v30  ;;  %p3323_p3 = pnand %p3322_p1, %p4875_p0 }
 0x2d6   : > { %2302 = vrot.lane.b32.xlu0 %v2271_v49, %s3499_s24  ;;  %2308 = vrot.lane.b32.xlu1 %v2292_v35, %s3500_s21  ;;  %s4872_s21 = sld [smem:[#allocation62_spill]]  ;;  %p3324_p10 = pneg %p3323_p3 }
 0x2d7   : > { %s3501_s24 = smov [#allocation20]  }
 0x2d8   : > { %s3325_s7 = sshll.u32 %s3501_s24, 4  ;;  %s3326_s7 = int_to_ptr.vmem [resolvable:$false] %s3325_s7 }
 0x2d9   : > { %s3327_s9 = scalar_lea.vmem %s3326_s7, 2048  ;;  %p3328_p9 = scmp.lt.s32.totalorder %s4584_s17, %s3326_s7 }
 0x2da   : > { %p3329_p8 = scmp.lt.s32.totalorder %s3327_s9, %s3321_s20 }
 0x2dc   : > { %s4582_s11 = scalar_lea.hbm %s4872_s21, %s2715_s1  ;;  %p3330_p11 = por %p3329_p8, %p3328_p9 }
 0x2de   : > { %p3331_p13 = pnand %p3330_p11, %p3324_p10 }
 0x327   : > { %v1634_v1 = vpop.permute.xlu0 %1633 }
 0x328   : > { %v1627_v40 = vpop.permute.xlu1 %1626 }
 0x32b   : > { %v1648_v10 = vpop.permute.xlu0 %1647 }
 0x32c   : > { %v1641_v32 = vpop.permute.xlu1 %1640 }
 0x32f   : > { %v1662_v62 = vpop.permute.xlu0 %1661 }
 0x330   : > { %v1655_v8 = vpop.permute.xlu1 %1654 }
 0x333   : > { %v1676_v9 = vpop.permute.xlu0 %1675 }
 0x337   : > { %v1669_v45 = vpop.permute.xlu1 %1668 }
 0x343   : > { %v2297_v12 = vpop.permute.xlu1 %2296 }
 0x344   : > { %2300 = vst.msk [vmem:[%s4550_s16] sm:$0x1] %vm2299_vm13, %v2297_v12 }
 0x348   : > { %v2303_v36 = vpop.permute.xlu0 %2302  ;;  %v2309_v29 = vpop.permute.xlu1 %2308 }
 0x349   : > { %2306 = vst.msk [vmem:[%s4550_s16] sm:$0x1] %vm2305_vm14, %v2303_v36 }
 0x34a   : > { %2312 = vst.msk [vmem:[%s4550_s16] sm:$0x1] %vm2311_vm15, %v2309_v29  ;;  %s4874_s16 = sand.u32 1, %s3660_s27  }
 0x34b   : > { %s4599_s1 = scalar_lea.sflag [#allocation21], %s4874_s16 }
 0x38a   : > { %v2822_v14 = vpop.f32.mrb[8].mxu1 }
 0x38b   : > { %v1780_v28 = vadd.f32 %v2822_v14, %v2695_v22  ;;  %v1774_v52 = vpop.f32.mrb[9].mxu1 }
 0x38c   : > { %v1775_v53 = vadd.f32 %v2695_v22, %v1774_v52 }
 0x38d   : > { %v1814_v24 = vmul.f32 %v1780_v28, %v1634_v1 }
 0x38e   : > { %v1813_v57 = vmul.f32 %v1775_v53, %v1627_v40  ;;  %v2825_v46 = vpop.f32.mrb[10].mxu1 }
 0x38f   : > { %1822 = vst.msk [vmem:[%s4561_s18 + $0x8] sm:$0xff] %vm1160_vm2, %v1814_v24  ;;  %v1790_v41 = vadd.f32 %v2825_v46, %v2695_v22  ;;  %v1784_v42 = vpop.f32.mrb[11].mxu1 }
 0x390   : > { %1821 = vst.msk [vmem:[%s4561_s18] sm:$0xff] %vm1160_vm2, %v1813_v57  ;;  %v1785_v17 = vadd.f32 %v2695_v22, %v1784_v42 }
 0x391   : > { %v1816_v51 = vmul.f32 %v1790_v41, %v1648_v10 }
 0x392   : > { %v1815_v55 = vmul.f32 %v1785_v17, %v1641_v32  ;;  %v2828_v56 = vpop.f32.mrb[12].mxu1 }
 0x393   : > { %1824 = vst.msk [vmem:[%s4561_s18 + $0x18] sm:$0xff] %vm1160_vm2, %v1816_v51  ;;  %v1800_v33 = vadd.f32 %v2828_v56, %v2695_v22  ;;  %v1794_v4 = vpop.f32.mrb[13].mxu1 }
 0x394   : > { %1823 = vst.msk [vmem:[%s4561_s18 + $0x10] sm:$0xff] %vm1160_vm2, %v1815_v55  ;;  %v1795_v59 = vadd.f32 %v2695_v22, %v1794_v4 }
 0x395   : > { %v1818_v3 = vmul.f32 %v1800_v33, %v1662_v62 }
 0x396   : > { %v1817_v7 = vmul.f32 %v1795_v59, %v1655_v8  ;;  %v2831_v50 = vpop.f32.mrb[14].mxu1 }
 0x397   : > { %1826 = vst.msk [vmem:[%s4561_s18 + $0x28] sm:$0xff] %vm1160_vm2, %v1818_v3  ;;  %v1810_v0 = vadd.f32 %v2831_v50, %v2695_v22  ;;  %v1804_v60 = vpop.f32.mrb[15].mxu1 }
 0x398   : > { %1825 = vst.msk [vmem:[%s4561_s18 + $0x20] sm:$0xff] %vm1160_vm2, %v1817_v7  ;;  %v1805_v5 = vadd.f32 %v2695_v22, %v1804_v60 }
 0x399   : > { %v1820_v34 = vmul.f32 %v1810_v0, %v1676_v9 }
 0x39a   : > { %v1819_v25 = vmul.f32 %v1805_v5, %v1669_v45 }
 0x39b   : > { %1828 = vst.msk [vmem:[%s4561_s18 + $0x38] sm:$0xff] %vm1160_vm2, %v1820_v34 }
 0x39c   : > { %1827 = vst.msk [vmem:[%s4561_s18 + $0x30] sm:$0xff] %vm1160_vm2, %v1819_v25 }
 0x39d   : > { %3334 = shalt.err (!%p3331_p13)
}
 0x39e   : > { %s3335_s27 = scalar_lea.hbm %s4582_s11, 1024  ;;  %s3339_s30 = scalar_lea.hbm %s4872_s21, 2048 }
 0x39f   : > { %p3336_p4 = scmp.ne.s32.totalorder %s4582_s11, %s3335_s27  ;;  %p3340_p12 = scmp.lt.u32.totalorder %s4582_s11, %s4872_s21 }
 0x3a0   : > { %p3341_p5 = scmp.lt.u32.totalorder %s3339_s30, %s3335_s27  ;;  %p3343_p1 = scmp.lt.u32.totalorder %s3335_s27, %s4582_s11 }
 0x3a1   : > { %p3337_p7 = pnand %p3336_p4, %p4875_p0 }
 0x3a2   : > { %p3342_p6 = por %p3341_p5, %p3340_p12 }
 0x3a3   : > { %p3338_p2 = pneg %p3337_p7 }
 0x3a4   : > { %p3344_p3 = por %p3343_p1, %p3342_p6 }
 0x3a6   : > { %p3345_p10 = pnand %p3344_p3, %p3338_p2 }
 0x3a8   : > { %3348 = shalt.err (!%p3345_p10)
}
 0x3a9   : > { %s3502_s9 = smov 128   ;;  %s3503_s16 = smov 8  }
 0x3aa   : > { %2904 = dma.vmem_to_hbm [thread:$0]  (%p4875_p0), %s4584_s17, 1024, %s4582_s11, %s4599_s1, %s3502_s9, %s3502_s9, %s3503_s16  }
 0x3ab   : > { %s3349_s20 = scalar_lea.vmem %s4593_s0, 16  ;;  %s3504_s24 = smov [#allocation22]  }
 0x3ac   : > { %p3350_p9 = scmp.ne.s32.totalorder %s4593_s0, %s3349_s20  ;;  %s3353_s27 = sshll.u32 %s3504_s24, 4  ;;  %s3354_s27 = int_to_ptr.vmem [resolvable:$false] %s3353_s27 }
 0x3ad   : > { %s3355_s18 = scalar_lea.vmem %s3354_s27, 32  ;;  %p3356_p13 = scmp.lt.s32.totalorder %s4593_s0, %s3354_s27 }
 0x3ae   : > { %p3351_p8 = pnand %p3350_p9, %p4875_p0  ;;  %p3357_p4 = scmp.lt.s32.totalorder %s3355_s18, %s3349_s20 }
 0x3b0   : > { %p3352_p11 = pneg %p3351_p8  ;;  %p3358_p7 = por %p3357_p4, %p3356_p13 }
 0x3b2   : > { %p3359_p2 = pnand %p3358_p7, %p3352_p11 }
 0x3b4   : > { %3362 = shalt.err (!%p3359_p2)
}
 0x3b5   : > { %s3363_s17 = scalar_lea.hbm %s4591_s3, 16  ;;  %s3367_s30 = scalar_lea.hbm %s4873_s23, 32 }
 0x3b6   : > { %p3364_p12 = scmp.ne.s32.totalorder %s4591_s3, %s3363_s17  ;;  %p3368_p1 = scmp.lt.u32.totalorder %s4591_s3, %s4873_s23 }
 0x3b7   : > { %p3369_p3 = scmp.lt.u32.totalorder %s3367_s30, %s3363_s17  ;;  %p3371_p9 = scmp.lt.u32.totalorder %s3363_s17, %s4591_s3 }
 0x3b8   : > { %p3365_p5 = pnand %p3364_p12, %p4875_p0 }
 0x3b9   : > { %p3370_p10 = por %p3369_p3, %p3368_p1 }
 0x3ba   : > { %p3366_p6 = pneg %p3365_p5 }
 0x3bb   : > { %p3372_p8 = por %p3371_p9, %p3370_p10 }
 0x3bd   : > { %p3373_p11 = pnand %p3372_p8, %p3366_p6 }
 0x3bf   : > { %3376 = shalt.err (!%p3373_p11)
}
 0x3c0   : > { %2905 = dma.vmem_to_hbm [thread:$0]  (%p4875_p0), %s4593_s0, 16, %s4591_s3, %s4599_s1   ;;  %v2186_v31 = vpop.f32.mrb[10].mxu0 }
 0x3c1   : > { %s4876_s20 = sld [smem:[#allocation60_spill]]  ;;  %s2708_s24 = sshll.u32 %s3471_s26, 7  ;;  %v2842_v44 = vpop.f32.mrb[11].mxu0 }
 0x3c2   : > { %s4877_s27 = sshll.u32 %s3953_s8, 3  ;;  %s4878_s30 = sld [smem:[#allocation61_spill]] }
 0x3c3   : > { %s918_s18 = scalar_lea.vmem [#allocation19], %s4877_s27  ;;  %s2314_s26 = scalar_lea.sflag [#allocation6], %s3953_s8 }
 0x3c4   : > { %s2337_s17 = sshll.u32 %s918_s18, 4  ;;  %s3505_s0 = smov [#allocation19]   ;;  %s4657_s17 = int_to_ptr.vmem [resolvable:$true] %s2337_s17 }
 0x3c5   : > { %s3377_s3 = scalar_lea.vmem %s4657_s17, 128  ;;  %s3381_s1 = sshll.u32 %s3505_s0, 4  ;;  %s3382_s1 = int_to_ptr.vmem [resolvable:$false] %s3381_s1 }
 0x3c6   : > { %p3378_p13 = scmp.ne.s32.totalorder %s4657_s17, %s3377_s3  ;;  %s3383_s7 = scalar_lea.vmem %s3382_s1, 256 }
 0x3c7   : > { %v2704_v2 = vld [vmem:[%s4876_s20] ss:$0 sm:$0xff]  ;;  %p3384_p2 = scmp.lt.s32.totalorder %s4657_s17, %s3382_s1  ;;  %p3385_p12 = scmp.lt.s32.totalorder %s3383_s7, %s3377_s3 }
 0x3c8   : > { %v2187_v58 = vadd.f32 %v2704_v2, %v2186_v31  ;;  %s4655_s6 = scalar_lea.hbm %s4878_s30, %s2708_s24  ;;  %p3379_p4 = pnand %p3378_p13, %p4875_p0 }
 0x3c9   : > { %p3386_p5 = por %p3385_p12, %p3384_p2 }
 0x3ca   : > { %v2190_v19 = vmul.f32 %v2187_v58, %v4392_v21  ;;  %p3380_p7 = pneg %p3379_p4 }
 0x3cc   : > { %2191 = vst.msk [vmem:[%s918_s18] sm:$0xff] %vm980_vm1, %v2190_v19  ;;  %p3387_p6 = pnand %p3386_p5, %p3380_p7 }
 0x3ce   : > { %3390 = shalt.err (!%p3387_p6)
}
 0x3cf   : > { %s3391_s8 = scalar_lea.hbm %s4655_s6, 128  ;;  %s3395_s20 = scalar_lea.hbm %s4878_s30, 256 }
 0x3d0   : > { %p3392_p1 = scmp.ne.s32.totalorder %s4655_s6, %s3391_s8  ;;  %p3396_p9 = scmp.lt.u32.totalorder %s4655_s6, %s4878_s30 }
 0x3d1   : > { %p3397_p8 = scmp.lt.u32.totalorder %s3395_s20, %s3391_s8  ;;  %p3399_p13 = scmp.lt.u32.totalorder %s3391_s8, %s4655_s6 }
 0x3d2   : > { %p3393_p3 = pnand %p3392_p1, %p4875_p0 }
 0x3d3   : > { %p3398_p11 = por %p3397_p8, %p3396_p9 }
 0x3d4   : > { %p3394_p10 = pneg %p3393_p3 }
 0x3d5   : > { %p3400_p4 = por %p3399_p13, %p3398_p11 }
 0x3d7   : > { %p3401_p7 = pnand %p3400_p4, %p3394_p10 }
 0x3d9   : > { %3404 = shalt.err (!%p3401_p7)
}
 0x3da   : > { %2903 = dma.vmem_to_hbm [thread:$0]  (%p4875_p0), %s4657_s17, 128, %s4655_s6, %s2314_s26  }
 0x3db PF: > { %s4879_s18 = sld [smem:[#allocation31_spill]]  ;;  %s2381_s11 = sand.u32 1, %s3459_s25  }
 0x3dc   : > { %p4880_p2 = scmp.ne.s32.totalorder %s4808_s28, 0  ;;  %s2382_s4 = scalar_lea.sflag [#allocation6], %s2381_s11 }
 0x3e1   : > { %p4881_p12 = scmp.ge.s32.totalorder %s4879_s18, 2 }
 0x3e3   : > { %p2939_p5 = pnand %p4881_p12, %p4880_p2 }
 0x3e5   : > { %3450 = dma.done.wait (!%p2939_p5), %s2382_s4, 128  }
 0x3e6   : > { %3452 = vsyncadd (!%p2939_p5), %s2382_s4, 4294967168  ;;  %s4882_s3 = sadd.s32 4294967294, %s4879_s18  }
 0x3e7   : > { %s2390_s0 = sand.u32 1, %s4882_s3  }
 0x3e8   : > { %s2391_s1 = scalar_lea.sflag [#allocation21], %s2390_s0 }
 0x3e9   : > { %3454 = dma.done.wait (!%p2939_p5), %s2391_s1, 1040  }
 0x3ea   : > { %3456 = vsyncadd (!%p2939_p5), %s2391_s1, 4294966256  ;;  %s50_s6 = sadd.s32 1, %s4879_s18   ;;  %s4883_s19 = sld [smem:[#allocation30_spill]] }
 0x3eb   : > { %p47_p0 = scmp.ge.s32.totalorder %s50_s6, 4   ;;  %s4884_s1 = sld [smem:[#allocation33_spill]] }
 0x3ec   : > { %s4885_s17 = sld [smem:[#allocation32_spill]]  ;;  %s4886_s25 = smov %s3463_s5 }
 0x3ed   : > { %s4888_s26 = smov %s3475_s2  ;;  %49 = sbr.rel (!%p47_p0) target bundleno = 35 (0x23), region = 236 }
 0x3f0   : > { %s4887_s5 = smov %s4883_s19 }
 0x3f2   : > { %s4889_s2 = smov %s4885_s17 }
 0x3f4   :  { %2404 = vsyncpa [#allocation5], 1 }
 0x3f5   :  { %2406 = vsyncpa [#allocation5 + $0x1], 1 }
 0x3f6   :  { %2407 = vsyncpa [#allocation8], 1 }
 0x3f7   :  { %2409 = vsyncpa [#allocation8 + $0x1], 1 }
 0x3f8   :  { %2410 = vsyncpa [#allocation11], 1 }
 0x3f9   :  { %2411 = vsyncpa [#allocation14], 1 }
 0x3fa   :  { %2412 = vsyncpa [#allocation17], 1 }
 0x3fb   :  { %2413 = vsyncpa [#allocation6], 1 }
 0x3fc   :  { %2415 = vsyncpa [#allocation6 + $0x1], 1 }
 0x3fd   :  { %2416 = vsyncpa [#allocation21], 1 }
 0x3fe   :  { %2418 = vsyncpa [#allocation21 + $0x1], 1 }

</bundles_post_ra>
